<compile_context>
chip_gen: v5e
topology: v5e:2x2
jax: 0.10.0
libtpu: 0.0.40
codegen_flags: <defaults>
</compile_context>

<pallas_src>
import functools
import math

import jax
import jax.numpy as jnp
from jax import lax
from jax.experimental import pallas as pl
from jax.experimental.pallas import tpu as pltpu


_BIG = 1e30  # added to padded rows' squared norms -> exp(-l2/bw) underflows to exactly 0


def _mmd_kernel(x_ref, y_ref, out_ref, smem, sqx_c, sqy_c, sqx_r, sqy_r,
                *, n_x, n_y, tile_rows, n_tiles):
    i = pl.program_id(0)
    np_rows = x_ref.shape[0]
    m_total = n_x + n_y

    @pl.when(i == 0)
    def _init():
        x = x_ref[...]
        y = y_ref[...]
        sx = jnp.sum(x * x, axis=-1, keepdims=True)      # (Np, 1); padded rows are 0
        sy = jnp.sum(y * y, axis=-1, keepdims=True)

        # Bandwidth from the algebraic identity (no M x M pass needed):
        #   sum_ij ||z_i - z_j||^2 = 2*M*sum_i ||z_i||^2 - 2*||sum_i z_i||^2
        sum_sq = jnp.sum(sx) + jnp.sum(sy)
        zsum = jnp.sum(x, axis=0, keepdims=True) + jnp.sum(y, axis=0, keepdims=True)
        sum_l2 = 2.0 * m_total * sum_sq - 2.0 * jnp.sum(zsum * zsum)
        bw = sum_l2 / float(m_total * m_total - m_total)
        smem[0] = -1.0 / bw       # single scalar divide, hoisted out of every exp
        smem[1] = 0.0             # loss-numerator accumulator

        # Push padded points "infinitely far away": every pair touching them gets a
        # huge l2, so their RBF weight is exactly 0 -> no masks/selects anywhere.
        rows = lax.broadcasted_iota(jnp.int32, (np_rows, 1), 0)
        sqx_c[...] = sx + jnp.where(rows < n_x, 0.0, _BIG)
        sqy_c[...] = sy + jnp.where(rows < n_y, 0.0, _BIG)
        sqx_r[...] = jnp.transpose(sqx_c[...])           # row layout for the "b" side
        sqy_r[...] = jnp.transpose(sqy_c[...])

    neg_inv_bw = smem[0]
    r0 = pl.multiple_of(i * tile_rows, tile_rows)
    xt = x_ref[pl.ds(r0, tile_rows), :]                  # (tile_rows, Dp)
    yt = y_ref[pl.ds(r0, tile_rows), :]
    sq_xt = sqx_c[pl.ds(r0, tile_rows), :]               # (tile_rows, 1)
    sq_yt = sqy_c[pl.ds(r0, tile_rows), :]
    x_all = x_ref[...]                                   # (Np, Dp), VMEM resident
    y_all = y_ref[...]
    sqx_row = sqx_r[...]                                 # (1, Np)
    sqy_row = sqy_r[...]

    def block_kernel_sum(a, sq_a_col, b, sq_b_row):
        # Gram on the MXU, contracting dim 1 of a with dim 1 of b (no b transpose).
        g = lax.dot_general(a, b, (((1,), (1,)), ((), ())),
                            preferred_element_type=jnp.float32)     # (tile_rows, Np)
        l2 = jnp.maximum(sq_a_col + sq_b_row - 2.0 * g, 0.0)
        # One exp per element; remaining bandwidth multipliers are powers of it.
        e1 = jnp.exp(l2 * neg_inv_bw)    # multiplier 1
        e2 = e1 * e1                     # multiplier 1/2
        e4 = e2 * e2                     # multiplier 1/4
        eh = jnp.sqrt(e1)                # multiplier 2
        eq = jnp.sqrt(eh)                # multiplier 4
        return jnp.sum(e4 + e2 + e1 + eh + eq)

    part = (block_kernel_sum(xt, sq_xt, x_all, sqx_row)            # XX rows-tile
            - 2.0 * block_kernel_sum(xt, sq_xt, y_all, sqy_row)    # XY rows-tile
            + block_kernel_sum(yt, sq_yt, y_all, sqy_row))         # YY rows-tile
    smem[1] = smem[1] + part

    @pl.when(i == n_tiles - 1)
    def _finalize():
        out_ref[0, 0] = smem[1] * (1.0 / float(n_x * n_x))


def _round_up(v, m):
    return ((v + m - 1) // m) * m


def mmd_loss(X, Y, *, block_rows=256):
    """Pallas implementation of MMDLoss(device).forward(X, Y) (n_kernels=5, mul_factor=2)."""
    n, d = X.shape
    assert Y.shape == (n, d), "MMDLoss requires X and Y with identical shapes"

    X = X.astype(jnp.float32)
    Y = Y.astype(jnp.float32)

    tr = max(8, _round_up(int(block_rows), 8))            # rows processed per grid step
    n_pad = _round_up(n, math.lcm(128, tr))               # lane-dense padded batch
    d_pad = _round_up(d, 128)                             # lane-dense padded features
    n_tiles = n_pad // tr

    Xp = jnp.pad(X, ((0, n_pad - n), (0, d_pad - d)))
    Yp = jnp.pad(Y, ((0, n_pad - n), (0, d_pad - d)))

    # VMEM budget: resident X/Y (double-buffered), sq scratch, ~10 live tile-slabs.
    vmem_bytes = (4 * n_pad * d_pad * 4
                  + 2 * n_pad * 128 * 4
                  + 10 * tr * n_pad * 4
                  + (2 << 20))
    vmem_limit = int(min(max(vmem_bytes, 32 * 1024 * 1024), 100 * 1024 * 1024))

    kern = functools.partial(_mmd_kernel, n_x=n, n_y=n, tile_rows=tr, n_tiles=n_tiles)
    out = pl.pallas_call(
        kern,
        out_shape=jax.ShapeDtypeStruct((1, 1), jnp.float32),
        grid=(n_tiles,),
        in_specs=[
            pl.BlockSpec((n_pad, d_pad), lambda i: (0, 0)),   # X stays resident in VMEM
            pl.BlockSpec((n_pad, d_pad), lambda i: (0, 0)),   # Y stays resident in VMEM
        ],
        out_specs=pl.BlockSpec((1, 1), lambda i: (0, 0),
                               memory_space=pltpu.MemorySpace.SMEM),
        scratch_shapes=[
            pltpu.SMEM((2,), jnp.float32),          # [ -1/bw , loss accumulator ]
            pltpu.VMEM((n_pad, 1), jnp.float32),    # ||x_i||^2 (+BIG on pad rows), column
            pltpu.VMEM((n_pad, 1), jnp.float32),    # ||y_i||^2 (+BIG on pad rows), column
            pltpu.VMEM((1, n_pad), jnp.float32),    # same, row layout
            pltpu.VMEM((1, n_pad), jnp.float32),
        ],
        compiler_params=pltpu.CompilerParams(
            dimension_semantics=("arbitrary",),     # sequential reduction into SMEM acc
            vmem_limit_bytes=vmem_limit,
        ),
    )(Xp, Yp)
    return out[0, 0]


def _mmd_loss_ref(X, Y, *, n_kernels=5, mul_factor=2.0):
    """Pure-JAX reference mirroring the PyTorch module, for verification."""
    mults = jnp.asarray(
        [mul_factor ** (k - n_kernels // 2) for k in range(n_kernels)], jnp.float32
    )
    Z = jnp.concatenate([X, Y], axis=0).astype(jnp.float32)
    d2 = jnp.maximum(
        jnp.sum(Z * Z, -1)[:, None] + jnp.sum(Z * Z, -1)[None, :] - 2.0 * Z @ Z.T, 0.0
    )
    M = Z.shape[0]
    bw = d2.sum() / (M * M - M)
    K = jnp.exp(-d2[None, ...] / (bw * mults)[:, None, None]).sum(0)
    N = X.shape[0]
    return (K[:N, :N] - 2.0 * K[:N, N:] + K[N:, N:]).mean()


if __name__ == "__main__":
    key = jax.random.PRNGKey(0)
    kx, ky = jax.random.split(key)

    # Small demo shapes: batch N=8 per distribution, feature dim D=32.
    N, D = 8, 32
    X = jax.random.normal(kx, (N, D), dtype=jnp.float32)
    Y = jax.random.normal(ky, (N, D), dtype=jnp.float32) + 0.5

    # block_rows=64 -> padded batch 128 splits into 2 grid steps, exercising the tiled
    # accumulation path as well as row/column padding.
    loss = mmd_loss(X, Y, block_rows=64)
    jax.block_until_ready(loss)
    ref = _mmd_loss_ref(X, Y)
    assert jnp.allclose(loss, ref, rtol=1e-4, atol=1e-5), (loss, ref)

    # Odd, unaligned sizes (padding in both dims, single tile with default block_rows).
    k2, k3 = jax.random.split(jax.random.PRNGKey(1))
    X2 = jax.random.normal(k2, (13, 21), dtype=jnp.float32)
    Y2 = 1.5 * jax.random.normal(k3, (13, 21), dtype=jnp.float32) + 0.25
    loss2 = mmd_loss(X2, Y2)
    jax.block_until_ready(loss2)
    ref2 = _mmd_loss_ref(X2, Y2)
    assert jnp.allclose(loss2, ref2, rtol=1e-4, atol=1e-5), (loss2, ref2)

    print("KERNEL_OK")
</pallas_src>

<mosaic_0001>
module attributes {stable_mosaic.version = 11 : i64} {
  func.func @_mmd_kernel(%arg0: i32, %arg1: memref<128x128xf32, #tpu.memory_space<vmem>>, %arg2: memref<128x128xf32, #tpu.memory_space<vmem>>, %arg3: memref<1x1xf32, #tpu.memory_space<smem>>, %arg4: memref<2xf32, #tpu.memory_space<smem>>, %arg5: memref<128x1xf32, #tpu.memory_space<vmem>>, %arg6: memref<128x1xf32, #tpu.memory_space<vmem>>, %arg7: memref<1x128xf32, #tpu.memory_space<vmem>>, %arg8: memref<1x128xf32, #tpu.memory_space<vmem>>) attributes {dimension_semantics = [#tpu.dimension_semantics<arbitrary>], iteration_bounds = array<i64: 2>, scalar_prefetch = 0 : i64, scratch_operands = 5 : i64, tpu.core_type = #tpu.core_type<tc>, window_params = [{pipeline_mode = #tpu.pipeline_mode<synchronous>, transform_indices = @transform_0, window_bounds = array<i64: 128, 128>}, {pipeline_mode = #tpu.pipeline_mode<synchronous>, transform_indices = @transform_1, window_bounds = array<i64: 128, 128>}, {transform_indices = @transform_2, window_bounds = array<i64: 1, 1>}]} {
    %c0_i32 = arith.constant 0 : i32
    %0 = arith.cmpi eq, %arg0, %c0_i32 : i32
    %1 = arith.extui %0 : i1 to i32
    %c0_i32_0 = arith.constant 0 : i32
    %2 = arith.cmpi ne, %1, %c0_i32_0 : i32
    scf.if %2 {
      %c0_27 = arith.constant 0 : index
      %c0_28 = arith.constant 0 : index
      %99 = vector.load %arg1[%c0_27, %c0_28] : memref<128x128xf32, #tpu.memory_space<vmem>>, vector<128x128xf32>
      %c0_29 = arith.constant 0 : index
      %c0_30 = arith.constant 0 : index
      %100 = vector.load %arg2[%c0_29, %c0_30] : memref<128x128xf32, #tpu.memory_space<vmem>>, vector<128x128xf32>
      %101 = arith.mulf %99, %99 : vector<128x128xf32>
      %cst_31 = arith.constant dense<0.000000e+00> : vector<128xf32>
      %102 = vector.multi_reduction <add>, %101, %cst_31 [1] : vector<128x128xf32> to vector<128xf32>
      %103 = vector.shape_cast %102 : vector<128xf32> to vector<128x1xf32>
      %104 = arith.mulf %100, %100 : vector<128x128xf32>
      %cst_32 = arith.constant dense<0.000000e+00> : vector<128xf32>
      %105 = vector.multi_reduction <add>, %104, %cst_32 [1] : vector<128x128xf32> to vector<128xf32>
      %106 = vector.shape_cast %105 : vector<128xf32> to vector<128x1xf32>
      %107 = vector.shape_cast %103 : vector<128x1xf32> to vector<1x128x1xf32>
      %cst_33 = arith.constant dense<0.000000e+00> : vector<1xf32>
      %108 = vector.multi_reduction <add>, %107, %cst_33 [1, 2] : vector<1x128x1xf32> to vector<1xf32>
      %109 = vector.shape_cast %108 : vector<1xf32> to vector<1x1x1xf32>
      %110 = vector.extract %109[0, 0, 0] : f32 from vector<1x1x1xf32>
      %111 = vector.shape_cast %106 : vector<128x1xf32> to vector<1x128x1xf32>
      %cst_34 = arith.constant dense<0.000000e+00> : vector<1xf32>
      %112 = vector.multi_reduction <add>, %111, %cst_34 [1, 2] : vector<1x128x1xf32> to vector<1xf32>
      %113 = vector.shape_cast %112 : vector<1xf32> to vector<1x1x1xf32>
      %114 = vector.extract %113[0, 0, 0] : f32 from vector<1x1x1xf32>
      %115 = arith.addf %110, %114 : f32
      %cst_35 = arith.constant dense<0.000000e+00> : vector<128xf32>
      %116 = vector.multi_reduction <add>, %99, %cst_35 [0] : vector<128x128xf32> to vector<128xf32>
      %117 = vector.shape_cast %116 : vector<128xf32> to vector<1x128xf32>
      %cst_36 = arith.constant dense<0.000000e+00> : vector<128xf32>
      %118 = vector.multi_reduction <add>, %100, %cst_36 [0] : vector<128x128xf32> to vector<128xf32>
      %119 = vector.shape_cast %118 : vector<128xf32> to vector<1x128xf32>
      %120 = arith.addf %117, %119 : vector<1x128xf32>
      %cst_37 = arith.constant 3.200000e+01 : f32
      %121 = arith.mulf %cst_37, %115 : f32
      %122 = arith.mulf %120, %120 : vector<1x128xf32>
      %123 = vector.shape_cast %122 : vector<1x128xf32> to vector<1x1x128xf32>
      %cst_38 = arith.constant dense<0.000000e+00> : vector<1xf32>
      %124 = vector.multi_reduction <add>, %123, %cst_38 [1, 2] : vector<1x1x128xf32> to vector<1xf32>
      %125 = vector.shape_cast %124 : vector<1xf32> to vector<1x1x1xf32>
      %126 = vector.extract %125[0, 0, 0] : f32 from vector<1x1x1xf32>
      %cst_39 = arith.constant 2.000000e+00 : f32
      %127 = arith.mulf %cst_39, %126 : f32
      %128 = arith.subf %121, %127 : f32
      %cst_40 = arith.constant 2.400000e+02 : f32
      %129 = arith.divf %128, %cst_40 : f32
      %cst_41 = arith.constant -1.000000e+00 : f32
      %130 = arith.divf %cst_41, %129 : f32
      %c0_42 = arith.constant 0 : index
      %131 = memref.load %arg4[%c0_42] : memref<2xf32, #tpu.memory_space<smem>>
      memref.store %130, %arg4[%c0_42] : memref<2xf32, #tpu.memory_space<smem>>
      %cst_43 = arith.constant 0.000000e+00 : f32
      %c1_44 = arith.constant 1 : index
      %132 = memref.load %arg4[%c1_44] : memref<2xf32, #tpu.memory_space<smem>>
      memref.store %cst_43, %arg4[%c1_44] : memref<2xf32, #tpu.memory_space<smem>>
      %133 = tpu.iota {dimensions = array<i32: 0>} : vector<128x1xi32>
      %c8_i32 = arith.constant 8 : i32
      %134 = vector.broadcast %c8_i32 : i32 to vector<128x1xi32>
      %135 = arith.cmpi slt, %133, %134 : vector<128x1xi32>
      %cst_45 = arith.constant 0.000000e+00 : f32
      %cst_46 = arith.constant 1.000000e+30 : f32
      %136 = vector.broadcast %cst_45 : f32 to vector<128x1xf32>
      %137 = vector.broadcast %cst_46 : f32 to vector<128x1xf32>
      %138 = arith.select %135, %136, %137 : vector<128x1xi1>, vector<128x1xf32>
      %139 = arith.addf %103, %138 : vector<128x1xf32>
      %c0_47 = arith.constant 0 : index
      %c0_48 = arith.constant 0 : index
      %140 = vector.load %arg5[%c0_47, %c0_48] : memref<128x1xf32, #tpu.memory_space<vmem>>, vector<128x1xf32>
      tpu.vector_store %arg5[%c0_47, %c0_48], %139 {strides = array<i32>} : memref<128x1xf32, #tpu.memory_space<vmem>>, vector<128x1xf32>,
      %c8_i32_49 = arith.constant 8 : i32
      %141 = vector.broadcast %c8_i32_49 : i32 to vector<128x1xi32>
      %142 = arith.cmpi slt, %133, %141 : vector<128x1xi32>
      %cst_50 = arith.constant 0.000000e+00 : f32
      %cst_51 = arith.constant 1.000000e+30 : f32
      %143 = vector.broadcast %cst_50 : f32 to vector<128x1xf32>
      %144 = vector.broadcast %cst_51 : f32 to vector<128x1xf32>
      %145 = arith.select %142, %143, %144 : vector<128x1xi1>, vector<128x1xf32>
      %146 = arith.addf %106, %145 : vector<128x1xf32>
      %c0_52 = arith.constant 0 : index
      %c0_53 = arith.constant 0 : index
      %147 = vector.load %arg6[%c0_52, %c0_53] : memref<128x1xf32, #tpu.memory_space<vmem>>, vector<128x1xf32>
      tpu.vector_store %arg6[%c0_52, %c0_53], %146 {strides = array<i32>} : memref<128x1xf32, #tpu.memory_space<vmem>>, vector<128x1xf32>,
      %c0_54 = arith.constant 0 : index
      %c0_55 = arith.constant 0 : index
      %148 = vector.load %arg5[%c0_54, %c0_55] : memref<128x1xf32, #tpu.memory_space<vmem>>, vector<128x1xf32>
      %149 = tpu.transpose %148, [1, 0] : vector<128x1xf32> -> vector<1x128xf32>
      %c0_56 = arith.constant 0 : index
      %c0_57 = arith.constant 0 : index
      %150 = vector.load %arg7[%c0_56, %c0_57] : memref<1x128xf32, #tpu.memory_space<vmem>>, vector<1x128xf32>
      tpu.vector_store %arg7[%c0_56, %c0_57], %149 {strides = array<i32>} : memref<1x128xf32, #tpu.memory_space<vmem>>, vector<1x128xf32>,
      %c0_58 = arith.constant 0 : index
      %c0_59 = arith.constant 0 : index
      %151 = vector.load %arg6[%c0_58, %c0_59] : memref<128x1xf32, #tpu.memory_space<vmem>>, vector<128x1xf32>
      %152 = tpu.transpose %151, [1, 0] : vector<128x1xf32> -> vector<1x128xf32>
      %c0_60 = arith.constant 0 : index
      %c0_61 = arith.constant 0 : index
      %153 = vector.load %arg8[%c0_60, %c0_61] : memref<1x128xf32, #tpu.memory_space<vmem>>, vector<1x128xf32>
      tpu.vector_store %arg8[%c0_60, %c0_61], %152 {strides = array<i32>} : memref<1x128xf32, #tpu.memory_space<vmem>>, vector<1x128xf32>,
    } else {
    }
    %c0 = arith.constant 0 : index
    %3 = memref.load %arg4[%c0] : memref<2xf32, #tpu.memory_space<smem>>
    %c64_i32 = arith.constant 64 : i32
    %4 = arith.muli %arg0, %c64_i32 : i32
    %5 = tpu.assume_multiple %4, 64 : i32
    %6 = arith.index_cast %5 : i32 to index
    %c0_1 = arith.constant 0 : index
    %7 = vector.load %arg1[%6, %c0_1] : memref<128x128xf32, #tpu.memory_space<vmem>>, vector<64x128xf32>
    %8 = arith.index_cast %5 : i32 to index
    %c0_2 = arith.constant 0 : index
    %9 = vector.load %arg2[%8, %c0_2] : memref<128x128xf32, #tpu.memory_space<vmem>>, vector<64x128xf32>
    %10 = arith.index_cast %5 : i32 to index
    %c0_3 = arith.constant 0 : index
    %11 = vector.load %arg5[%10, %c0_3] : memref<128x1xf32, #tpu.memory_space<vmem>>, vector<64x1xf32>
    %12 = arith.index_cast %5 : i32 to index
    %c0_4 = arith.constant 0 : index
    %13 = vector.load %arg6[%12, %c0_4] : memref<128x1xf32, #tpu.memory_space<vmem>>, vector<64x1xf32>
    %c0_5 = arith.constant 0 : index
    %c0_6 = arith.constant 0 : index
    %14 = vector.load %arg1[%c0_5, %c0_6] : memref<128x128xf32, #tpu.memory_space<vmem>>, vector<128x128xf32>
    %c0_7 = arith.constant 0 : index
    %c0_8 = arith.constant 0 : index
    %15 = vector.load %arg2[%c0_7, %c0_8] : memref<128x128xf32, #tpu.memory_space<vmem>>, vector<128x128xf32>
    %c0_9 = arith.constant 0 : index
    %c0_10 = arith.constant 0 : index
    %16 = vector.load %arg7[%c0_9, %c0_10] : memref<1x128xf32, #tpu.memory_space<vmem>>, vector<1x128xf32>
    %c0_11 = arith.constant 0 : index
    %c0_12 = arith.constant 0 : index
    %17 = vector.load %arg8[%c0_11, %c0_12] : memref<1x128xf32, #tpu.memory_space<vmem>>, vector<1x128xf32>
    %cst = arith.constant dense<0.000000e+00> : vector<64x128xf32>
    %18 = tpu.matmul %7, %14, %cst {dimension_numbers = #tpu.dot_dimension_numbers<[1], [1], [0], [0], [0, 0, 1, 0], [], []>} : vector<64x128xf32>, vector<128x128xf32>, vector<64x128xf32> -> vector<64x128xf32>
    %19 = vector.broadcast %11 : vector<64x1xf32> to vector<64x128xf32>
    %20 = vector.broadcast %16 : vector<1x128xf32> to vector<64x128xf32>
    %21 = arith.addf %19, %20 : vector<64x128xf32>
    %cst_13 = arith.constant 2.000000e+00 : f32
    %22 = vector.broadcast %cst_13 : f32 to vector<64x128xf32>
    %23 = arith.mulf %22, %18 : vector<64x128xf32>
    %24 = arith.subf %21, %23 : vector<64x128xf32>
    %cst_14 = arith.constant 0.000000e+00 : f32
    %25 = vector.broadcast %cst_14 : f32 to vector<64x128xf32>
    %26 = arith.maximumf %24, %25 : vector<64x128xf32>
    %27 = vector.broadcast %3 : f32 to vector<64x128xf32>
    %28 = arith.mulf %26, %27 : vector<64x128xf32>
    %29 = math.exp %28 : vector<64x128xf32>
    %30 = arith.mulf %29, %29 : vector<64x128xf32>
    %31 = arith.mulf %30, %30 : vector<64x128xf32>
    %32 = math.sqrt %29 : vector<64x128xf32>
    %33 = math.sqrt %32 : vector<64x128xf32>
    %34 = arith.addf %31, %30 : vector<64x128xf32>
    %35 = arith.addf %34, %29 : vector<64x128xf32>
    %36 = arith.addf %35, %32 : vector<64x128xf32>
    %37 = arith.addf %36, %33 : vector<64x128xf32>
    %38 = vector.shape_cast %37 : vector<64x128xf32> to vector<1x64x128xf32>
    %cst_15 = arith.constant dense<0.000000e+00> : vector<1xf32>
    %39 = vector.multi_reduction <add>, %38, %cst_15 [1, 2] : vector<1x64x128xf32> to vector<1xf32>
    %40 = vector.shape_cast %39 : vector<1xf32> to vector<1x1x1xf32>
    %41 = vector.extract %40[0, 0, 0] : f32 from vector<1x1x1xf32>
    %cst_16 = arith.constant dense<0.000000e+00> : vector<64x128xf32>
    %42 = tpu.matmul %7, %15, %cst_16 {dimension_numbers = #tpu.dot_dimension_numbers<[1], [1], [0], [0], [0, 0, 1, 0], [], []>} : vector<64x128xf32>, vector<128x128xf32>, vector<64x128xf32> -> vector<64x128xf32>
    %43 = vector.broadcast %11 : vector<64x1xf32> to vector<64x128xf32>
    %44 = vector.broadcast %17 : vector<1x128xf32> to vector<64x128xf32>
    %45 = arith.addf %43, %44 : vector<64x128xf32>
    %cst_17 = arith.constant 2.000000e+00 : f32
    %46 = vector.broadcast %cst_17 : f32 to vector<64x128xf32>
    %47 = arith.mulf %46, %42 : vector<64x128xf32>
    %48 = arith.subf %45, %47 : vector<64x128xf32>
    %cst_18 = arith.constant 0.000000e+00 : f32
    %49 = vector.broadcast %cst_18 : f32 to vector<64x128xf32>
    %50 = arith.maximumf %48, %49 : vector<64x128xf32>
    %51 = vector.broadcast %3 : f32 to vector<64x128xf32>
    %52 = arith.mulf %50, %51 : vector<64x128xf32>
    %53 = math.exp %52 : vector<64x128xf32>
    %54 = arith.mulf %53, %53 : vector<64x128xf32>
    %55 = arith.mulf %54, %54 : vector<64x128xf32>
    %56 = math.sqrt %53 : vector<64x128xf32>
    %57 = math.sqrt %56 : vector<64x128xf32>
    %58 = arith.addf %55, %54 : vector<64x128xf32>
    %59 = arith.addf %58, %53 : vector<64x128xf32>
    %60 = arith.addf %59, %56 : vector<64x128xf32>
    %61 = arith.addf %60, %57 : vector<64x128xf32>
    %62 = vector.shape_cast %61 : vector<64x128xf32> to vector<1x64x128xf32>
    %cst_19 = arith.constant dense<0.000000e+00> : vector<1xf32>
    %63 = vector.multi_reduction <add>, %62, %cst_19 [1, 2] : vector<1x64x128xf32> to vector<1xf32>
    %64 = vector.shape_cast %63 : vector<1xf32> to vector<1x1x1xf32>
    %65 = vector.extract %64[0, 0, 0] : f32 from vector<1x1x1xf32>
    %cst_20 = arith.constant 2.000000e+00 : f32
    %66 = arith.mulf %cst_20, %65 : f32
    %67 = arith.subf %41, %66 : f32
    %cst_21 = arith.constant dense<0.000000e+00> : vector<64x128xf32>
    %68 = tpu.matmul %9, %15, %cst_21 {dimension_numbers = #tpu.dot_dimension_numbers<[1], [1], [0], [0], [0, 0, 1, 0], [], []>} : vector<64x128xf32>, vector<128x128xf32>, vector<64x128xf32> -> vector<64x128xf32>
    %69 = vector.broadcast %13 : vector<64x1xf32> to vector<64x128xf32>
    %70 = vector.broadcast %17 : vector<1x128xf32> to vector<64x128xf32>
    %71 = arith.addf %69, %70 : vector<64x128xf32>
    %cst_22 = arith.constant 2.000000e+00 : f32
    %72 = vector.broadcast %cst_22 : f32 to vector<64x128xf32>
    %73 = arith.mulf %72, %68 : vector<64x128xf32>
    %74 = arith.subf %71, %73 : vector<64x128xf32>
    %cst_23 = arith.constant 0.000000e+00 : f32
    %75 = vector.broadcast %cst_23 : f32 to vector<64x128xf32>
    %76 = arith.maximumf %74, %75 : vector<64x128xf32>
    %77 = vector.broadcast %3 : f32 to vector<64x128xf32>
    %78 = arith.mulf %76, %77 : vector<64x128xf32>
    %79 = math.exp %78 : vector<64x128xf32>
    %80 = arith.mulf %79, %79 : vector<64x128xf32>
    %81 = arith.mulf %80, %80 : vector<64x128xf32>
    %82 = math.sqrt %79 : vector<64x128xf32>
    %83 = math.sqrt %82 : vector<64x128xf32>
    %84 = arith.addf %81, %80 : vector<64x128xf32>
    %85 = arith.addf %84, %79 : vector<64x128xf32>
    %86 = arith.addf %85, %82 : vector<64x128xf32>
    %87 = arith.addf %86, %83 : vector<64x128xf32>
    %88 = vector.shape_cast %87 : vector<64x128xf32> to vector<1x64x128xf32>
    %cst_24 = arith.constant dense<0.000000e+00> : vector<1xf32>
    %89 = vector.multi_reduction <add>, %88, %cst_24 [1, 2] : vector<1x64x128xf32> to vector<1xf32>
    %90 = vector.shape_cast %89 : vector<1xf32> to vector<1x1x1xf32>
    %91 = vector.extract %90[0, 0, 0] : f32 from vector<1x1x1xf32>
    %92 = arith.addf %67, %91 : f32
    %c1 = arith.constant 1 : index
    %93 = memref.load %arg4[%c1] : memref<2xf32, #tpu.memory_space<smem>>
    %94 = arith.addf %93, %92 : f32
    %c1_25 = arith.constant 1 : index
    %95 = memref.load %arg4[%c1_25] : memref<2xf32, #tpu.memory_space<smem>>
    memref.store %94, %arg4[%c1_25] : memref<2xf32, #tpu.memory_space<smem>>
    %c1_i32 = arith.constant 1 : i32
    %96 = arith.cmpi eq, %arg0, %c1_i32 : i32
    %97 = arith.extui %96 : i1 to i32
    %c0_i32_26 = arith.constant 0 : i32
    %98 = arith.cmpi ne, %97, %c0_i32_26 : i32
    scf.if %98 {
      %c1_27 = arith.constant 1 : index
      %99 = memref.load %arg4[%c1_27] : memref<2xf32, #tpu.memory_space<smem>>
      %cst_28 = arith.constant 1.562500e-02 : f32
      %100 = arith.mulf %99, %cst_28 : f32
      %c0_29 = arith.constant 0 : index
      %c0_30 = arith.constant 0 : index
      %101 = memref.load %arg3[%c0_29, %c0_30] : memref<1x1xf32, #tpu.memory_space<smem>>
      memref.store %100, %arg3[%c0_29, %c0_30] : memref<1x1xf32, #tpu.memory_space<smem>>
    } else {
    }
    return
  }
  func.func @transform_0(%arg0: i32) -> (i32, i32) {
    %c0_i32 = arith.constant 0 : i32
    %c0_i32_0 = arith.constant 0 : i32
    %c0_i32_1 = arith.constant 0 : i32
    return %c0_i32, %c0_i32_0 : i32, i32
  }
  func.func @transform_1(%arg0: i32) -> (i32, i32) {
    %c0_i32 = arith.constant 0 : i32
    %c0_i32_0 = arith.constant 0 : i32
    %c0_i32_1 = arith.constant 0 : i32
    return %c0_i32, %c0_i32_0 : i32, i32
  }
  func.func @transform_2(%arg0: i32) -> (i32, i32) {
    %c0_i32 = arith.constant 0 : i32
    %c0_i32_0 = arith.constant 0 : i32
    %c0_i32_1 = arith.constant 0 : i32
    return %c0_i32, %c0_i32_0 : i32, i32
  }
}

</mosaic_0001>

<bundles_post_ra>
// kernel: tpu_custom_call.1
= control target key start
LH: loop header
LB: loop body
LE: loop exit
PB: predicated region body
PF: predicated region fallthrough
CT: control target
= control target key end

     0   :  { %7 = vsyncpa [#allocation8], 0  ;;  %s3539_s0 = inlined_call_operand.hbm [shape: f32[128,128], index: 0, kind: input, shape index: {}]   ;;  %s3540_s1 = inlined_call_operand.hbm [shape: f32[128,128], index: 1, kind: input, shape index: {}]   ;;  %s3541_s2 = inlined_call_operand.hbm [shape: f32[1,1], index: 2, kind: output, shape index: {}]  }
   0x1   :  { %8 = vsyncpa [#allocation11], 0 }
   0x2   :  { %9 = vsyncpa [#allocation9], 0  ;;  %s2317_s9 = smov 0  }
   0x3 LB: > { %s94_s12 = sshll.u32 %s3539_s0, 4  ;;  %s2326_s13 = sadd.s32 4294967295, %s2292_s9   ;;  %s2292_s9 = sphi %s2317_s9, %s15_s9   ;;  %s95_s12 = int_to_ptr.hbm [resolvable:$true] %s94_s12 }
   0x4   : > { %p1956_p0 = scmp.ge.s32.totalorder %s2292_s9, 1  ;;  %p83_p1 = scmp.lt.s32.totalorder %s2292_s9, 3 }
   0x5   : > { %p1957_p2 = scmp.ne.s32.totalorder %s2326_s13, 0  ;;  %p2024_p3 = scmp.eq.s32.totalorder %s2326_s13, 0 }
   0x6   : > { %p2332_p4 = pnand %p1956_p0, %p83_p1  ;;  %s2294_s15 = smov [#allocation7]  }
   0x7   : > { %s96_s16 = sshll.u32 %s2294_s15, 4  ;;  %s108_s19 = sshll.u32 %s3540_s1, 4  ;;  %s97_s16 = int_to_ptr.vmem [resolvable:$true] %s96_s16  ;;  %s109_s19 = int_to_ptr.hbm [resolvable:$true] %s108_s19 }
   0x8   : > { %p2017_p5 = pneg %p2332_p4  ;;  %s2295_s20 = smov [#allocation10]  }
   0x9   : > { %s110_s21 = sshll.u32 %s2295_s20, 4  ;;  %s2296_s22 = smov 128   ;;  %s111_s21 = int_to_ptr.vmem [resolvable:$true] %s110_s21 }
   0xa   : > { %p2018_p6 = pnand %p2024_p3, %p2017_p5  ;;  %s2297_s23 = smov 8  }
   0xb   : > { %126 = sbr.rel (%p2332_p4) target bundleno = 1106 (0x452), region = 28 }
   0xc   : > { %2020 = dma.hbm_to_vmem [thread:$0]  (!%p2018_p6), %s95_s12, 2048, %s97_s16, [#allocation8], %s2296_s22, %s2296_s22, %s2297_s23  }
   0xd   : > { %2023 = dma.hbm_to_vmem [thread:$0]  (!%p2018_p6), %s109_s19, 2048, %s111_s21, [#allocation11], %s2296_s22, %s2296_s22, %s2297_s23  }
  0x10   : > { %2279 = dma.done.wait (%p2024_p3), [#allocation8], 2048  }
  0x11   : > { %2281 = vsyncadd (%p2024_p3), [#allocation8], 4294965248 }
  0x12   : > { %2283 = dma.done.wait (%p2024_p3), [#allocation11], 2048  }
  0x13   : > { %2285 = vsyncadd (%p2024_p3), [#allocation11], 4294965248  ;;  %147 = sbr.rel (%p1957_p2) target bundleno = 485 (0x1e5), region = 40  ;;  %s2299_s24 = smov (!%p1957_p2), 0.0  }
  0x14   : > { %445 = sst [smem:[#allocation2 + $0x1]] (!%p1957_p2), %s2299_s24 }
  0x18   : > { %v164_v0 = vld [vmem:[#allocation10] sm:$0xff]  ;;  %v165_v1 = vld [vmem:[#allocation10 + $0x8] sm:$0xff]  ;;  %v150_v7 = vld [vmem:[#allocation7 + $0x10] sm:$0xff]  ;;  %vm276_vm0 = vcmask 7168   ;;  %vm403_vm1 = vcmask 1040384  }
  0x19   : > { %v148_v2 = vld [vmem:[#allocation7] sm:$0xff]  ;;  %v228_v3 = vmul.f32 %v164_v0, %v164_v0  ;;  %v379_v4 = vadd.f32 %v165_v1, %v164_v0  ;;  %v149_v5 = vld [vmem:[#allocation7 + $0x8] sm:$0xff]  ;;  %v182_v9 = vmul.f32 %v150_v7, %v150_v7  ;;  %v166_v10 = vld [vmem:[#allocation10 + $0x10] sm:$0xff]  ;;  %v229_v18 = vmul.f32 %v165_v1, %v165_v1 }
  0x1a   : > { %v180_v6 = vmul.f32 %v148_v2, %v148_v2  ;;  %v358_v8 = vadd.f32 %v149_v5, %v148_v2  ;;  %v167_v13 = vld [vmem:[#allocation10 + $0x18] sm:$0xff]  ;;  %v168_v17 = vld [vmem:[#allocation10 + $0x20] sm:$0xff]  ;;  %v181_v19 = vmul.f32 %v149_v5, %v149_v5  ;;  %v230_v22 = vmul.f32 %v166_v10, %v166_v10  ;;  %v169_v24 = vld [vmem:[#allocation10 + $0x28] sm:$0xff] }
  0x1b   : > { %244 = vadd.xlane.f32.xlu1 %v228_v3  ;;  %v380_v11 = vadd.f32 %v379_v4, %v166_v10  ;;  %200 = vadd.xlane.f32.xlu2 %v182_v9  ;;  %v151_v15 = vld [vmem:[#allocation7 + $0x18] sm:$0xff]  ;;  %v152_v20 = vld [vmem:[#allocation7 + $0x20] sm:$0xff]  ;;  %v153_v25 = vld [vmem:[#allocation7 + $0x28] sm:$0xff]  ;;  %v231_v37 = vmul.f32 %v167_v13, %v167_v13  ;;  %v232_v50 = vmul.f32 %v168_v17, %v168_v17 }
  0x1c   : > { %196 = vadd.xlane.f32.xlu0 %v180_v6  ;;  %v359_v12 = vadd.f32 %v358_v8, %v150_v7  ;;  %v170_v28 = vld [vmem:[#allocation10 + $0x30] sm:$0xff]  ;;  %v171_v32 = vld [vmem:[#allocation10 + $0x38] sm:$0xff]  ;;  %v172_v36 = vld [vmem:[#allocation10 + $0x40] sm:$0xff]  ;;  %v183_v38 = vmul.f32 %v151_v15, %v151_v15  ;;  %v184_v41 = vmul.f32 %v152_v20, %v152_v20  ;;  %v185_v49 = vmul.f32 %v153_v25, %v153_v25 }
  0x1d   : > { %v381_v14 = vadd.f32 %v380_v11, %v167_v13  ;;  %v154_v30 = vld [vmem:[#allocation7 + $0x30] sm:$0xff]  ;;  %v155_v33 = vld [vmem:[#allocation7 + $0x38] sm:$0xff]  ;;  %v156_v39 = vld [vmem:[#allocation7 + $0x40] sm:$0xff]  ;;  %v233_v51 = vmul.f32 %v169_v24, %v169_v24  ;;  %v234_v59 = vmul.f32 %v170_v28, %v170_v28  ;;  %v235_v4 = vmul.f32 %v171_v32, %v171_v32 }
  0x1e   : > { %v360_v16 = vadd.f32 %v359_v12, %v151_v15  ;;  %v173_v43 = vld [vmem:[#allocation10 + $0x48] sm:$0xff]  ;;  %v158_v47 = vld [vmem:[#allocation7 + $0x50] sm:$0xff]  ;;  %v159_v52 = vld [vmem:[#allocation7 + $0x58] sm:$0xff]  ;;  %v186_v60 = vmul.f32 %v154_v30, %v154_v30  ;;  %v187_v62 = vmul.f32 %v155_v33, %v155_v33  ;;  %v188_v3 = vmul.f32 %v156_v39, %v156_v39 }
  0x1f   : > { %v382_v21 = vadd.f32 %v381_v14, %v168_v17  ;;  %v157_v45 = vld [vmem:[#allocation7 + $0x48] sm:$0xff]  ;;  %v174_v53 = vld [vmem:[#allocation10 + $0x50] sm:$0xff]  ;;  %v175_v56 = vld [vmem:[#allocation10 + $0x58] sm:$0xff]  ;;  %v236_v5 = vmul.f32 %v172_v36, %v172_v36  ;;  %v237_v13 = vmul.f32 %v173_v43, %v173_v43 }
  0x20   : > { %v361_v23 = vadd.f32 %v360_v16, %v152_v20  ;;  %v176_v58 = vld [vmem:[#allocation10 + $0x60] sm:$0xff]  ;;  %v161_v1 = vld [vmem:[#allocation7 + $0x68] sm:$0xff]  ;;  %v162_v6 = vld [vmem:[#allocation7 + $0x70] sm:$0xff]  ;;  %v189_v14 = vmul.f32 %v157_v45, %v157_v45  ;;  %v190_v16 = vmul.f32 %v158_v47, %v158_v47  ;;  %v238_v20 = vmul.f32 %v174_v53, %v174_v53 }
  0x21   : > { %v383_v26 = vadd.f32 %v382_v21, %v169_v24  ;;  %v160_v63 = vld [vmem:[#allocation7 + $0x60] sm:$0xff]  ;;  %v177_v7 = vld [vmem:[#allocation10 + $0x68] sm:$0xff]  ;;  %v178_v10 = vld [vmem:[#allocation10 + $0x70] sm:$0xff]  ;;  %v239_v21 = vmul.f32 %v175_v56, %v175_v56  ;;  %v193_v24 = vmul.f32 %v161_v1, %v161_v1 }
  0x22   : > { %v362_v27 = vadd.f32 %v361_v23, %v153_v25  ;;  %v179_v12 = vld [vmem:[#allocation10 + $0x78] sm:$0xff]  ;;  %v192_v23 = vmul.f32 %v160_v63, %v160_v63  ;;  %v194_v25 = vmul.f32 %v162_v6, %v162_v6 }
  0x23   : > { %246 = vadd.xlane.f32.xlu1 %v229_v18  ;;  %v384_v29 = vadd.f32 %v383_v26, %v170_v28  ;;  %248 = vadd.xlane.f32.xlu2 %v230_v22  ;;  %v163_v17 = vld [vmem:[#allocation7 + $0x78] sm:$0xff]  ;;  %v240_v22 = vmul.f32 %v176_v58, %v176_v58  ;;  %v241_v26 = vmul.f32 %v177_v7, %v177_v7 }
  0x24   : > { %198 = vadd.xlane.f32.xlu0 %v181_v19  ;;  %v363_v31 = vadd.f32 %v362_v27, %v154_v30  ;;  %v191_v19 = vmul.f32 %v159_v52, %v159_v52  ;;  %v242_v27 = vmul.f32 %v178_v10, %v178_v10  ;;  %v243_v28 = vmul.f32 %v179_v12, %v179_v12 }
  0x25   : > { %v385_v34 = vadd.f32 %v384_v29, %v171_v32  ;;  %v195_v29 = vmul.f32 %v163_v17, %v163_v17 }
  0x26   : > { %v364_v35 = vadd.f32 %v363_v31, %v155_v33 }
  0x27   : > { %v386_v40 = vadd.f32 %v385_v34, %v172_v36 }
  0x28   : > { %v365_v42 = vadd.f32 %v364_v35, %v156_v39 }
  0x29   : > { %v387_v44 = vadd.f32 %v386_v40, %v173_v43 }
  0x2a   : > { %v366_v46 = vadd.f32 %v365_v42, %v157_v45 }
  0x2b   : > { %250 = vadd.xlane.f32.xlu1 %v231_v37  ;;  %204 = vadd.xlane.f32.xlu2 %v184_v41  ;;  %v388_v55 = vadd.f32 %v387_v44, %v174_v53 }
  0x2c   : > { %202 = vadd.xlane.f32.xlu0 %v183_v38  ;;  %v367_v48 = vadd.f32 %v366_v46, %v158_v47 }
  0x2d   : > { %v389_v57 = vadd.f32 %v388_v55, %v175_v56 }
  0x2e   : > { %v368_v54 = vadd.f32 %v367_v48, %v159_v52 }
  0x2f   : > { %v390_v61 = vadd.f32 %v389_v57, %v176_v58 }
  0x30   : > { %v369_v0 = vadd.f32 %v368_v54, %v160_v63 }
  0x31   : > { %v391_v9 = vadd.f32 %v390_v61, %v177_v7 }
  0x32   : > { %v370_v2 = vadd.f32 %v369_v0, %v161_v1 }
  0x33   : > { %206 = vadd.xlane.f32.xlu1 %v185_v49  ;;  %254 = vadd.xlane.f32.xlu2 %v233_v51  ;;  %v392_v11 = vadd.f32 %v391_v9, %v178_v10 }
  0x34   : > { %252 = vadd.xlane.f32.xlu0 %v232_v50  ;;  %v371_v8 = vadd.f32 %v370_v2, %v162_v6 }
  0x35   : > { %v2355_v15 = vadd.f32 %v392_v11, %v179_v12 }
  0x36   : > { %v372_v18 = vadd.f32 %v371_v8, %v163_v17 }
  0x37   : > { %v394_v51 = vrot.slane %v2355_v15, 4 }
  0x38   : > { %v373_v52 = vrot.slane %v372_v18, 4 }
  0x39   : > { %v395_v54 = vadd.f32 %v394_v51, %v2355_v15 }
  0x3a   : > { %v374_v55 = vadd.f32 %v373_v52, %v372_v18 }
  0x3b   : > { %256 = vadd.xlane.f32.xlu1 %v234_v59  ;;  %210 = vadd.xlane.f32.xlu2 %v187_v62  ;;  %v396_v61 = vrot.slane %v395_v54, 2 }
  0x3c   : > { %208 = vadd.xlane.f32.xlu0 %v186_v60  ;;  %v375_v62 = vrot.slane %v374_v55, 2 }
  0x3d   : > { %v397_v1 = vadd.f32 %v396_v61, %v395_v54 }
  0x3e   : > { %v376_v0 = vadd.f32 %v375_v62, %v374_v55 }
  0x43   : > { %212 = vadd.xlane.f32.xlu1 %v188_v3  ;;  %260 = vadd.xlane.f32.xlu2 %v236_v5  ;;  %v398_v5 = vrot.slane %v397_v1, 1 }
  0x44   : > { %258 = vadd.xlane.f32.xlu0 %v235_v4  ;;  %v377_v4 = vrot.slane %v376_v0, 1 }
  0x45   : > { %v399_v15 = vadd.f32 %v398_v5, %v397_v1 }
  0x4b   : > { %262 = vadd.xlane.f32.xlu1 %v237_v13  ;;  %216 = vadd.xlane.f32.xlu2 %v190_v16 }
  0x4c   : > { %214 = vadd.xlane.f32.xlu0 %v189_v14  ;;  %v378_v14 = vadd.f32 %v377_v4, %v376_v0 }
  0x53   : > { %218 = vadd.xlane.f32.xlu1 %v191_v19  ;;  %266 = vadd.xlane.f32.xlu2 %v239_v21  ;;  %v400_v19 = vadd.f32 %v399_v15, %v378_v14 }
  0x54   : > { %264 = vadd.xlane.f32.xlu0 %v238_v20 }
  0x5b   : > { %268 = vadd.xlane.f32.xlu1 %v240_v22  ;;  %222 = vadd.xlane.f32.xlu2 %v193_v24 }
  0x5c   : > { %220 = vadd.xlane.f32.xlu0 %v192_v23  ;;  %v402_v23 = vmul.f32 %v400_v19, %v400_v19 }
  0x63   : > { %224 = vadd.xlane.f32.xlu1 %v194_v25  ;;  %272 = vadd.xlane.f32.xlu2 %v242_v27 }
  0x64   : > { %270 = vadd.xlane.f32.xlu0 %v241_v26 }
  0x6b   : > { %274 = vadd.xlane.f32.xlu1 %v243_v28 }
  0x6c   : > { %226 = vadd.xlane.f32.xlu0 %v195_v29 }
  0x8e   : > { %v245_v30 = vpop.xlane.xlu1 %244  ;;  %v2358_v32 = vpop.xlane.xlu2 %200 }
  0x8f   : > { %v197_v31 = vpop.xlane.xlu0 %196  ;;  %543 = vst.msk [vmem:[#allocation4] sm:$0xff] %vm276_vm0, %v245_v30  ;;  %v497_v33 = vadd.f32 1e+30, %v2358_v32  ;;  %v317_v12 = vsel %vm276_vm0, %v245_v30, 0.0  ;;  %v280_v20 = vsel %vm276_vm0, %v2358_v32, 0.0 }
  0x90   : > { %511 = vst.msk [vmem:[#allocation3] sm:$0xff] %vm276_vm0, %v197_v31  ;;  %v277_v13 = vsel %vm276_vm0, %v197_v31, 0.0 }
  0x91   : > { %513 = vst.msk [vmem:[#allocation3 + $0x10] sm:$0xff] %vm276_vm0, %v497_v33 }
  0x96   : > { %v247_v34 = vpop.xlane.xlu1 %246  ;;  %v249_v38 = vpop.xlane.xlu2 %248 }
  0x97   : > { %v199_v35 = vpop.xlane.xlu0 %198  ;;  %v528_v36 = vadd.f32 1e+30, %v247_v34  ;;  %v529_v39 = vadd.f32 1e+30, %v249_v38  ;;  %v318_v6 = vsel %vm276_vm0, %v247_v34, 0.0  ;;  %v320_v18 = vsel %vm276_vm0, %v249_v38, 0.0 }
  0x98   : > { %v496_v37 = vadd.f32 1e+30, %v199_v35  ;;  %v278_v7 = vsel %vm276_vm0, %v199_v35, 0.0  ;;  %v319_v16 = vadd.f32 %v318_v6, %v317_v12 }
  0x99   : > { %544 = vst.msk [vmem:[#allocation4 + $0x8] sm:$0xff] %vm276_vm0, %v528_v36  ;;  %v279_v17 = vadd.f32 %v278_v7, %v277_v13  ;;  %v404_v36 = vsel %vm403_vm1, %v402_v23, 0.0 }
  0x9a   : > { %512 = vst.msk [vmem:[#allocation3 + $0x8] sm:$0xff] %vm276_vm0, %v496_v37  ;;  %v321_v24 = vadd.f32 %v320_v18, %v319_v16  ;;  %405 = vadd.xlane.f32.xlu1 %v404_v36 }
  0x9b   : > { %545 = vst.msk [vmem:[#allocation4 + $0x10] sm:$0xff] %vm276_vm0, %v529_v39  ;;  %v281_v25 = vadd.f32 %v280_v20, %v279_v17 }
  0x9e   : > { %v251_v40 = vpop.xlane.xlu1 %250  ;;  %v2366_v44 = vpop.xlane.xlu2 %204 }
  0x9f   : > { %v203_v41 = vpop.xlane.xlu0 %202  ;;  %v530_v42 = vadd.f32 1e+30, %v251_v40  ;;  %v499_v45 = vadd.f32 1e+30, %v2366_v44  ;;  %v322_v21 = vsel %vm276_vm0, %v251_v40, 0.0  ;;  %v284_v32 = vsel %vm276_vm0, %v2366_v44, 0.0 }
  0xa0   : > { %v498_v43 = vadd.f32 1e+30, %v203_v41  ;;  %v282_v22 = vsel %vm276_vm0, %v203_v41, 0.0  ;;  %v323_v33 = vadd.f32 %v322_v21, %v321_v24 }
  0xa1   : > { %546 = vst.msk [vmem:[#allocation4 + $0x18] sm:$0xff] %vm276_vm0, %v530_v42  ;;  %v283_v34 = vadd.f32 %v282_v22, %v281_v25 }
  0xa2   : > { %514 = vst.msk [vmem:[#allocation3 + $0x18] sm:$0xff] %vm276_vm0, %v498_v43 }
  0xa3   : > { %515 = vst.msk [vmem:[#allocation3 + $0x20] sm:$0xff] %vm276_vm0, %v499_v45  ;;  %v285_v40 = vadd.f32 %v284_v32, %v283_v34 }
  0xa6   : > { %v2372_v46 = vpop.xlane.xlu1 %206  ;;  %v2375_v50 = vpop.xlane.xlu2 %254 }
  0xa7   : > { %v253_v47 = vpop.xlane.xlu0 %252  ;;  %v500_v48 = vadd.f32 1e+30, %v2372_v46  ;;  %v532_v53 = vadd.f32 1e+30, %v2375_v50  ;;  %v286_v38 = vsel %vm276_vm0, %v2372_v46, 0.0  ;;  %v326_v39 = vsel %vm276_vm0, %v2375_v50, 0.0 }
  0xa8   : > { %v531_v49 = vadd.f32 1e+30, %v253_v47  ;;  %v324_v28 = vsel %vm276_vm0, %v253_v47, 0.0  ;;  %v287_v43 = vadd.f32 %v286_v38, %v285_v40 }
  0xa9   : > { %516 = vst.msk [vmem:[#allocation3 + $0x28] sm:$0xff] %vm276_vm0, %v500_v48  ;;  %v325_v37 = vadd.f32 %v324_v28, %v323_v33 }
  0xaa   : > { %547 = vst.msk [vmem:[#allocation4 + $0x20] sm:$0xff] %vm276_vm0, %v531_v49 }
  0xab   : > { %548 = vst.msk [vmem:[#allocation4 + $0x28] sm:$0xff] %vm276_vm0, %v532_v53  ;;  %v327_v44 = vadd.f32 %v326_v39, %v325_v37 }
  0xae   : > { %v257_v56 = vpop.xlane.xlu1 %256  ;;  %v2383_v60 = vpop.xlane.xlu2 %210 }
  0xaf   : > { %v209_v57 = vpop.xlane.xlu0 %208  ;;  %v533_v58 = vadd.f32 1e+30, %v257_v56  ;;  %v502_v63 = vadd.f32 1e+30, %v2383_v60  ;;  %v328_v41 = vsel %vm276_vm0, %v257_v56, 0.0  ;;  %v290_v50 = vsel %vm276_vm0, %v2383_v60, 0.0 }
  0xb0   : > { %v501_v59 = vadd.f32 1e+30, %v209_v57  ;;  %v288_v42 = vsel %vm276_vm0, %v209_v57, 0.0  ;;  %v329_v46 = vadd.f32 %v328_v41, %v327_v44  ;;  %v608_v41 = vld [vmem:[#allocation4] sm:$0xff]  ;;  %v560_v44 = vld [vmem:[#allocation3 + $0x8] sm:$0xff] }
  0xb1   : > { %549 = vst.msk [vmem:[#allocation4 + $0x30] sm:$0xff] %vm276_vm0, %v533_v58  ;;  %v289_v53 = vadd.f32 %v288_v42, %v287_v43  ;;  %v559_v42 = vld [vmem:[#allocation3] sm:$0xff]  ;;  %v609_v43 = vld [vmem:[#allocation4 + $0x8] sm:$0xff] }
  0xb2   : > { %517 = vst.msk [vmem:[#allocation3 + $0x30] sm:$0xff] %vm276_vm0, %v501_v59 }
  0xb3   : > { %518 = vst.msk [vmem:[#allocation3 + $0x38] sm:$0xff] %vm276_vm0, %v502_v63  ;;  %v291_v58 = vadd.f32 %v290_v50, %v289_v53  ;;  %v564_v53 = vld [vmem:[#allocation3 + $0x28] sm:$0xff] }
  0xb6   : > { %v2389_v2 = vpop.xlane.xlu1 %212  ;;  %v261_v10 = vpop.xlane.xlu2 %260 }
  0xb7   : > { %v259_v3 = vpop.xlane.xlu0 %258  ;;  %v503_v8 = vadd.f32 1e+30, %v2389_v2  ;;  %v535_v11 = vadd.f32 1e+30, %v261_v10  ;;  %v292_v56 = vsel %vm276_vm0, %v2389_v2, 0.0  ;;  %v332_v57 = vsel %vm276_vm0, %v261_v10, 0.0 }
  0xb8   : > { %v534_v9 = vadd.f32 1e+30, %v259_v3  ;;  %v330_v48 = vsel %vm276_vm0, %v259_v3, 0.0  ;;  %v293_v62 = vadd.f32 %v292_v56, %v291_v58 }
  0xb9   : > { %519 = vst.msk [vmem:[#allocation3 + $0x40] sm:$0xff] %vm276_vm0, %v503_v8  ;;  %v331_v55 = vadd.f32 %v330_v48, %v329_v46  ;;  %v611_v48 = vld [vmem:[#allocation4 + $0x18] sm:$0xff]  ;;  %v613_v46 = vld [vmem:[#allocation4 + $0x28] sm:$0xff]  ;;  %v565_v50 = vld [vmem:[#allocation3 + $0x30] sm:$0xff] }
  0xba   : > { %550 = vst.msk [vmem:[#allocation4 + $0x38] sm:$0xff] %vm276_vm0, %v534_v9  ;;  %v566_v56 = vld [vmem:[#allocation3 + $0x38] sm:$0xff] }
  0xbb   : > { %551 = vst.msk [vmem:[#allocation4 + $0x40] sm:$0xff] %vm276_vm0, %v535_v11  ;;  %v333_v63 = vadd.f32 %v332_v57, %v331_v55  ;;  %v2298_v57 = vmov 240.0  }
  0xbc   : > { %2047 = vrcp.f32 %v2298_v57 }
  0xbe   : > { %v263_v26 = vpop.xlane.xlu1 %262  ;;  %v217_v31 = vpop.xlane.xlu2 %216 }
  0xbf   : > { %v215_v27 = vpop.xlane.xlu0 %214  ;;  %v536_v29 = vadd.f32 1e+30, %v263_v26  ;;  %v505_v35 = vadd.f32 1e+30, %v217_v31  ;;  %v334_v59 = vsel %vm276_vm0, %v263_v26, 0.0  ;;  %v296_v8 = vsel %vm276_vm0, %v217_v31, 0.0 }
  0xc0   : > { %v504_v30 = vadd.f32 1e+30, %v215_v27  ;;  %v294_v61 = vsel %vm276_vm0, %v215_v27, 0.0  ;;  %v335_v6 = vadd.f32 %v334_v59, %v333_v63  ;;  %v567_v59 = vld [vmem:[#allocation3 + $0x40] sm:$0xff] }
  0xc1   : > { %552 = vst.msk [vmem:[#allocation4 + $0x48] sm:$0xff] %vm276_vm0, %v536_v29  ;;  %v295_v2 = vadd.f32 %v294_v61, %v293_v62  ;;  %v615_v55 = vld [vmem:[#allocation4 + $0x38] sm:$0xff] }
  0xc2   : > { %520 = vst.msk [vmem:[#allocation3 + $0x48] sm:$0xff] %vm276_vm0, %v504_v30  ;;  %v616_v58 = vld [vmem:[#allocation4 + $0x40] sm:$0xff]  ;;  %v2048_v63 = vpop.eup %2047 }
  0xc3   : > { %521 = vst.msk [vmem:[#allocation3 + $0x50] sm:$0xff] %vm276_vm0, %v505_v35  ;;  %v297_v12 = vadd.f32 %v296_v8, %v295_v2  ;;  %vm421_vm2 = vweird.f32 %v2048_v63 }
  0xc6   : > { %v219_v45 = vpop.xlane.xlu1 %218  ;;  %v267_v52 = vpop.xlane.xlu2 %266 }
  0xc7   : > { %v265_v47 = vpop.xlane.xlu0 %264  ;;  %v506_v49 = vadd.f32 1e+30, %v219_v45  ;;  %v538_v54 = vadd.f32 1e+30, %v267_v52  ;;  %v298_v10 = vsel %vm276_vm0, %v219_v45, 0.0  ;;  %v338_v11 = vsel %vm276_vm0, %v267_v52, 0.0 }
  0xc8   : > { %v537_v51 = vadd.f32 1e+30, %v265_v47  ;;  %v336_v1 = vsel %vm276_vm0, %v265_v47, 0.0  ;;  %v299_v15 = vadd.f32 %v298_v10, %v297_v12  ;;  %v610_v45 = vld [vmem:[#allocation4 + $0x10] sm:$0xff]  ;;  %v563_v52 = vld [vmem:[#allocation3 + $0x20] sm:$0xff] }
  0xc9   : > { %522 = vst.msk [vmem:[#allocation3 + $0x58] sm:$0xff] %vm276_vm0, %v506_v49  ;;  %v337_v9 = vadd.f32 %v336_v1, %v335_v6  ;;  %v561_v47 = vld [vmem:[#allocation3 + $0x10] sm:$0xff]  ;;  %v562_v49 = vld [vmem:[#allocation3 + $0x18] sm:$0xff]  ;;  %v568_v1 = vld [vmem:[#allocation3 + $0x48] sm:$0xff] }
  0xca   : > { %553 = vst.msk [vmem:[#allocation4 + $0x50] sm:$0xff] %vm276_vm0, %v537_v51  ;;  %v612_v51 = vld [vmem:[#allocation4 + $0x20] sm:$0xff] }
  0xcb   : > { %554 = vst.msk [vmem:[#allocation4 + $0x58] sm:$0xff] %vm276_vm0, %v538_v54  ;;  %v339_v16 = vadd.f32 %v338_v11, %v337_v9  ;;  %v614_v54 = vld [vmem:[#allocation4 + $0x30] sm:$0xff] }
  0xce   : > { %v269_v60 = vpop.xlane.xlu1 %268  ;;  %v223_v5 = vpop.xlane.xlu2 %222 }
  0xcf   : > { %v221_v0 = vpop.xlane.xlu0 %220  ;;  %v539_v3 = vadd.f32 1e+30, %v269_v60  ;;  %v508_v7 = vadd.f32 1e+30, %v223_v5  ;;  %v340_v13 = vsel %vm276_vm0, %v269_v60, 0.0  ;;  %v302_v26 = vsel %vm276_vm0, %v223_v5, 0.0 }
  0xd0   : > { %v507_v4 = vadd.f32 1e+30, %v221_v0  ;;  %v300_v14 = vsel %vm276_vm0, %v221_v0, 0.0  ;;  %v341_v23 = vadd.f32 %v340_v13, %v339_v16  ;;  %v617_v0 = vld [vmem:[#allocation4 + $0x48] sm:$0xff] }
  0xd1   : > { %555 = vst.msk [vmem:[#allocation4 + $0x60] sm:$0xff] %vm276_vm0, %v539_v3  ;;  %v301_v24 = vadd.f32 %v300_v14, %v299_v15  ;;  %v417_v3 = vmul.f32 240.0, %v2048_v63  ;;  %v618_v14 = vld [vmem:[#allocation4 + $0x50] sm:$0xff] }
  0xd2   : > { %523 = vst.msk [vmem:[#allocation3 + $0x60] sm:$0xff] %vm276_vm0, %v507_v4  ;;  %v569_v15 = vld [vmem:[#allocation3 + $0x50] sm:$0xff] }
  0xd3   : > { %524 = vst.msk [vmem:[#allocation3 + $0x68] sm:$0xff] %vm276_vm0, %v508_v7  ;;  %v303_v30 = vadd.f32 %v302_v26, %v301_v24  ;;  %v418_v8 = vsub.f32 1.0, %v417_v3  ;;  %v619_v26 = vld [vmem:[#allocation4 + $0x58] sm:$0xff] }
  0xd5   : > { %v419_v16 = vmul.f32 %v2048_v63, %v418_v8 }
  0xd6   : > { %v225_v17 = vpop.xlane.xlu1 %224  ;;  %v273_v22 = vpop.xlane.xlu2 %272 }
  0xd7   : > { %v271_v18 = vpop.xlane.xlu0 %270  ;;  %v509_v19 = vadd.f32 1e+30, %v225_v17  ;;  %v541_v25 = vadd.f32 1e+30, %v273_v22  ;;  %v304_v28 = vsel %vm276_vm0, %v225_v17, 0.0  ;;  %v344_v29 = vsel %vm276_vm0, %v273_v22, 0.0 }
  0xd8   : > { %v342_v20 = vsel %vm276_vm0, %v271_v18, 0.0  ;;  %v540_v21 = vadd.f32 1e+30, %v271_v18  ;;  %v305_v31 = vadd.f32 %v304_v28, %v303_v30  ;;  %v420_v22 = vadd.f32 %v2048_v63, %v419_v16 }
  0xd9   : > { %525 = vst.msk [vmem:[#allocation3 + $0x70] sm:$0xff] %vm276_vm0, %v509_v19  ;;  %v343_v27 = vadd.f32 %v342_v20, %v341_v23  ;;  %v571_v30 = vld [vmem:[#allocation3 + $0x60] sm:$0xff] }
  0xda   : > { %556 = vst.msk [vmem:[#allocation4 + $0x68] sm:$0xff] %vm276_vm0, %v540_v21  ;;  %v422_v28 = vsel %vm421_vm2, %v2048_v63, %v420_v22 }
  0xdb   : > { %557 = vst.msk [vmem:[#allocation4 + $0x70] sm:$0xff] %vm276_vm0, %v541_v25  ;;  %v345_v33 = vadd.f32 %v344_v29, %v343_v27  ;;  %v570_v27 = vld [vmem:[#allocation3 + $0x58] sm:$0xff]  ;;  %v620_v29 = vld [vmem:[#allocation4 + $0x60] sm:$0xff] }
  0xde   : > { %v275_v34 = vpop.xlane.xlu1 %274 }
  0xdf   : > { %v227_v35 = vpop.xlane.xlu0 %226  ;;  %v346_v32 = vsel %vm276_vm0, %v275_v34, 0.0  ;;  %v542_v36 = vadd.f32 1e+30, %v275_v34 }
  0xe0   : > { %v306_v37 = vsel %vm276_vm0, %v227_v35, 0.0  ;;  %v510_v38 = vadd.f32 1e+30, %v227_v35  ;;  %v347_v39 = vadd.f32 %v346_v32, %v345_v33  ;;  %v572_v33 = vld [vmem:[#allocation3 + $0x68] sm:$0xff]  ;;  %v573_v35 = vld [vmem:[#allocation3 + $0x70] sm:$0xff] }
  0xe1   : > { %v307_v40 = vadd.f32 %v306_v37, %v305_v31  ;;  %558 = vst.msk [vmem:[#allocation4 + $0x78] sm:$0xff] %vm276_vm0, %v542_v36  ;;  %v621_v31 = vld [vmem:[#allocation4 + $0x68] sm:$0xff] }
  0xe2   : > { %526 = vst.msk [vmem:[#allocation3 + $0x78] sm:$0xff] %vm276_vm0, %v510_v38  ;;  %348 = vadd.xlane.f32.xlu0 %v347_v39  ;;  %v622_v34 = vld [vmem:[#allocation4 + $0x70] sm:$0xff] }
  0xe3   : > { %308 = vadd.xlane.f32.xlu2 %v307_v40 }
  0xe8   : > { %v623_v32 = vld [vmem:[#allocation4 + $0x78] sm:$0xff] }
  0xe9   : > { %v574_v36 = vld [vmem:[#allocation3 + $0x78] sm:$0xff] }
 0x10b   : > { %624 = vxpose.xlu0.b32.start [1/16] (narrow) %v608_v41, 8 }
 0x10c   : > { %575 = vxpose.xlu2.b32.start [1/16] (narrow) %v559_v42, 8 }
 0x10d   : > { %v406_v61 = vpop.xlane.xlu1 %405 }
 0x10e   : > { %v407_v62 = vrot.slane %v406_v61, 4 }
 0x110   : > { %v408_v60 = vadd.f32 %v407_v62, %v406_v61 }
 0x112   : > { %v409_v6 = vrot.slane %v408_v60, 2 }
 0x113   : > { %625 = vxpose.xlu0.b32.cont [2/16] (narrow) %v609_v43, 8 }
 0x114   : > { %576 = vxpose.xlu2.b32.cont [2/16] (narrow) %v560_v44, 8  ;;  %v410_v11 = vadd.f32 %v409_v6, %v408_v60 }
 0x116   : > { %v411_v21 = vrot.slane %v410_v11, 1 }
 0x118   : > { %v412_v25 = vadd.f32 %v411_v21, %v410_v11 }
 0x11b   : > { %626 = vxpose.xlu0.b32.cont [3/16] (narrow) %v610_v45, 8 }
 0x11c   : > { %577 = vxpose.xlu2.b32.cont [3/16] (narrow) %v561_v47, 8 }
 0x123   : > { %627 = vxpose.xlu0.b32.cont [4/16] (narrow) %v611_v48, 8 }
 0x124   : > { %578 = vxpose.xlu2.b32.cont [4/16] (narrow) %v562_v49, 8 }
 0x12b   : > { %628 = vxpose.xlu0.b32.cont [5/16] (narrow) %v612_v51, 8 }
 0x12c   : > { %579 = vxpose.xlu2.b32.cont [5/16] (narrow) %v563_v52, 8 }
 0x133   : > { %629 = vxpose.xlu0.b32.cont [6/16] (narrow) %v613_v46, 8 }
 0x134   : > { %580 = vxpose.xlu2.b32.cont [6/16] (narrow) %v564_v53, 8 }
 0x13b   : > { %630 = vxpose.xlu0.b32.cont [7/16] (narrow) %v614_v54, 8 }
 0x13c   : > { %581 = vxpose.xlu2.b32.cont [7/16] (narrow) %v565_v50, 8 }
 0x143   : > { %631 = vxpose.xlu0.b32.cont [8/16] (narrow) %v615_v55, 8 }
 0x144   : > { %582 = vxpose.xlu2.b32.cont [8/16] (narrow) %v566_v56, 8 }
 0x14b   : > { %632 = vxpose.xlu0.b32.cont [9/16] (narrow) %v616_v58, 8 }
 0x14c   : > { %583 = vxpose.xlu2.b32.cont [9/16] (narrow) %v567_v59, 8 }
 0x153   : > { %633 = vxpose.xlu0.b32.cont [10/16] (narrow) %v617_v0, 8 }
 0x154   : > { %584 = vxpose.xlu2.b32.cont [10/16] (narrow) %v568_v1, 8 }
 0x155   : > { %v349_v5 = vpop.xlane.xlu0 %348 }
 0x156   : > { %v309_v4 = vpop.xlane.xlu2 %308  ;;  %v350_v7 = vrot.slane %v349_v5, 4 }
 0x157   : > { %v310_v2 = vrot.slane %v309_v4, 4 }
 0x158   : > { %v351_v10 = vadd.f32 %v350_v7, %v349_v5 }
 0x159   : > { %v311_v9 = vadd.f32 %v310_v2, %v309_v4 }
 0x15a   : > { %v352_v13 = vrot.slane %v351_v10, 2 }
 0x15b   : > { %v312_v12 = vrot.slane %v311_v9, 2  ;;  %634 = vxpose.xlu0.b32.cont [11/16] (narrow) %v618_v14, 8 }
 0x15c   : > { %585 = vxpose.xlu2.b32.cont [11/16] (narrow) %v569_v15, 8  ;;  %v353_v18 = vadd.f32 %v352_v13, %v351_v10 }
 0x15d   : > { %v313_v17 = vadd.f32 %v312_v12, %v311_v9 }
 0x15e   : > { %v354_v20 = vrot.slane %v353_v18, 1 }
 0x15f   : > { %v314_v19 = vrot.slane %v313_v17, 1 }
 0x160   : > { %v355_v24 = vadd.f32 %v354_v20, %v353_v18 }
 0x161   : > { %v315_v23 = vadd.f32 %v314_v19, %v313_v17 }
 0x163   : > { %1987 = vpush %v315_v23  ;;  %635 = vxpose.xlu0.b32.cont [12/16] (narrow) %v619_v26, 8 }
 0x164   : > { %1989 = vpush %v355_v24  ;;  %586 = vxpose.xlu2.b32.cont [12/16] (narrow) %v570_v27, 8 }
 0x165   : > { %1991 = vpush %v412_v25 }
 0x166   : > { %1993 = vpush %v422_v28 }
 0x16b   : > { %636 = vxpose.xlu0.b32.cont [13/16] (narrow) %v620_v29, 8 }
 0x16c   : > { %587 = vxpose.xlu2.b32.cont [13/16] (narrow) %v571_v30, 8 }
 0x173   : > { %637 = vxpose.xlu0.b32.cont [14/16] (narrow) %v621_v31, 8 }
 0x174   : > { %588 = vxpose.xlu2.b32.cont [14/16] (narrow) %v572_v33, 8 }
 0x17b   : > { %638 = vxpose.xlu0.b32.cont [15/16] (narrow) %v622_v34, 8 }
 0x17c   : > { %589 = vxpose.xlu2.b32.cont [15/16] (narrow) %v573_v35, 8 }
 0x183   : > { %639 = vxpose.xlu0.b32.end [16/16] (narrow) %v623_v32, 8 }
 0x184   : > { %590 = vxpose.xlu2.b32.end [16/16] (narrow) %v574_v36, 8 }
 0x194   : > { %s1988_s25 = spop %1987 }
 0x195   : > { %s1990_s26 = spop %1989 }
 0x196   : > { %s357_s27 = sadd.f32 %s1990_s26, %s1988_s25  ;;  %s1992_s28 = spop %1991 }
 0x197   : > { %s414_s29 = smul.f32 2.0, %s1992_s28  ;;  %s1994_s3 = spop %1993 }
 0x198   : > { %s401_s30 = smul.f32 32.0, %s357_s27 }
 0x19a   : > { %s415_s4 = ssub.f32 %s401_s30, %s414_s29 }
 0x19c   : > { %s424_s5 = smul.f32 %s1994_s3, %s415_s4 }
 0x19e   : > { %v425_v37 = vstv %s424_s5 }
 0x19f   : > { %2049 = vrcp.f32 %v425_v37  ;;  %v437_v41 = vand.u32 2147483648, %v425_v37  ;;  %v435_v43 = vand.u32 2147483647, %v425_v37  ;;  %vm431_vm4 = vweird.f32 %v425_v37 }
 0x1a1   : > { %v438_v45 = vor.u32 1.1754944e-38, %v437_v41  ;;  %vm436_vm6 = vcmp.eq.f32.partialorder %v435_v43, 8.507059e+37 }
 0x1a5   : > { %v2050_v38 = vpop.eup %2049  ;;  %v591_v49 = vpop.trf.xlu2 }
 0x1a6   : > { %v427_v39 = vmul.f32 %v2050_v38, %v425_v37  ;;  %vm432_vm3 = vweird.f32 %v2050_v38  ;;  %607 = vst [vmem:[#allocation5] sm:$0x1] %v591_v49 }
 0x1a7   : > { %vm433_vm5 = vmor %vm431_vm4, %vm432_vm3 }
 0x1a8   : > { %v428_v40 = vsub.f32 1.0, %v427_v39 }
 0x1aa   : > { %v429_v42 = vmul.f32 %v2050_v38, %v428_v40 }
 0x1ac   : > { %v430_v44 = vadd.f32 %v2050_v38, %v429_v42 }
 0x1ae   : > { %v434_v47 = vsel %vm433_vm5, %v2050_v38, %v430_v44 }
 0x1af   : > { %v439_v48 = vsel %vm436_vm6, %v438_v45, %v434_v47  ;;  %v640_v51 = vpop.trf.xlu0 }
 0x1b0   : > { %1995 = vpush %v439_v48 }
 0x1b1   : > { %656 = vst [vmem:[#allocation6] sm:$0x1] %v640_v51 }
 0x1e1   : > { %s1996_s6 = spop %1995 }
 0x1e2   : > { %s441_s7 = smul.f32 -1.0, %s1996_s6 }
 0x1e4   : > { %443 = sst [smem:[#allocation2]] %s441_s7 }
 0x1e5 PF: > { %v710_v52 = vld [vmem:[#allocation7 + $0x78] sm:$0xff]  ;;  %v709_v53 = vld [vmem:[#allocation7 + $0x70] sm:$0xff]  ;;  %v708_v50 = vld [vmem:[#allocation7 + $0x68] sm:$0xff]  ;;  %s2448_s8 = sshll.u32 %s2326_s13, 6  ;;  %v2300_v0 = vmov 0   ;;  %s657_s15 = sld [smem:[#allocation2]] }
 0x1e6   : > { %v726_v46 = vld [vmem:[#allocation10 + $0x78] sm:$0xff]  ;;  %729 = vmatpush.xpose.msra.mxu0 %v710_v52  ;;  %1971 = vmatpush.xpose.msra.mxu3 %v710_v52  ;;  %v725_v54 = vld [vmem:[#allocation10 + $0x70] sm:$0xff]  ;;  %v724_v55 = vld [vmem:[#allocation10 + $0x68] sm:$0xff]  ;;  %s2451_s10 = scalar_lea.vmem [#allocation3], %s2448_s8  ;;  %s2458_s11 = scalar_lea.vmem [#allocation4], %s2448_s8 }
 0x1e7   : > { %1126 = vmatpush.xpose.msra.mxu1 %v726_v46  ;;  %1484 = vmatpush.xpose.msra.mxu2 %v726_v46  ;;  %v707_v56 = vld [vmem:[#allocation7 + $0x60] sm:$0xff]  ;;  %v706_v58 = vld [vmem:[#allocation7 + $0x58] sm:$0xff]  ;;  %v705_v61 = vld [vmem:[#allocation7 + $0x50] sm:$0xff]  ;;  %s2467_s12 = scalar_lea.vmem [#allocation7], %s2448_s8  ;;  %s2472_s14 = scalar_lea.vmem [#allocation10], %s2448_s8 }
 0x1e8   : > { %v723_v57 = vld [vmem:[#allocation10 + $0x60] sm:$0xff]  ;;  %v722_v59 = vld [vmem:[#allocation10 + $0x58] sm:$0xff]  ;;  %v721_v62 = vld [vmem:[#allocation10 + $0x50] sm:$0xff]  ;;  %2052 = vset.pattern.permute.xlu1 %v2300_v0  ;;  %2053 = vset.pattern.permute.xlu2 %v2300_v0  ;;  %s1964_s19 = sld [smem:[#allocation2 + $0x1]]  ;;  %s1896_s25 = sshll.u32 %s3541_s2, 4  ;;  %s1897_s25 = int_to_ptr.hbm [resolvable:$true] %s1896_s25 }
 0x1e9   : > { %v704_v63 = vld [vmem:[#allocation7 + $0x48] sm:$0xff]  ;;  %v678_v3 = vld [vmem:[%s2451_s10] sm:$0xff]  ;;  %v681_v7 = vld [vmem:[%s2451_s10 + $0x18] sm:$0xff]  ;;  %p2028_p7 = scmp.eq.s32.totalorder %s2326_s13, 1  ;;  %s2301_s28 = smov [#allocation12]  }
 0x1ea   : > { %730 = vmatpush.xpose.msra.mxu0 %v709_v53  ;;  %1972 = vmatpush.xpose.msra.mxu3 %v709_v53  ;;  %v720_v60 = vld [vmem:[#allocation10 + $0x48] sm:$0xff]  ;;  %v703_v4 = vld [vmem:[#allocation7 + $0x40] sm:$0xff]  ;;  %v702_v6 = vld [vmem:[#allocation7 + $0x38] sm:$0xff] }
 0x1eb   : > { %1127 = vmatpush.xpose.msra.mxu1 %v725_v54  ;;  %1485 = vmatpush.xpose.msra.mxu2 %v725_v54  ;;  %v680_v1 = vld [vmem:[%s2451_s10 + $0x10] sm:$0xff]  ;;  %v719_v5 = vld [vmem:[#allocation10 + $0x40] sm:$0xff]  ;;  %v718_v2 = vld [vmem:[#allocation10 + $0x38] sm:$0xff] }
 0x1ec   : > { %2051 = vset.pattern.permute.xlu0 %v2300_v0  ;;  %782 = vperm.xlu1 %2052, %v680_v1   ;;  %v679_v8 = vld [vmem:[%s2451_s10 + $0x8] sm:$0xff]  ;;  %v701_v9 = vld [vmem:[#allocation7 + $0x30] sm:$0xff]  ;;  %v682_v14 = vld [vmem:[%s2451_s10 + $0x20] sm:$0xff] }
 0x1ed   : > { %v717_v10 = vld [vmem:[#allocation10 + $0x30] sm:$0xff]  ;;  %v700_v11 = vld [vmem:[#allocation7 + $0x28] sm:$0xff]  ;;  %v699_v15 = vld [vmem:[#allocation7 + $0x20] sm:$0xff] }
 0x1ee   : > { %731 = vmatpush.xpose.msra.mxu0 %v708_v50  ;;  %1973 = vmatpush.xpose.msra.mxu3 %v708_v50  ;;  %v716_v12 = vld [vmem:[#allocation10 + $0x28] sm:$0xff]  ;;  %v715_v16 = vld [vmem:[#allocation10 + $0x20] sm:$0xff]  ;;  %v698_v17 = vld [vmem:[#allocation7 + $0x18] sm:$0xff] }
 0x1ef   : > { %1128 = vmatpush.xpose.msra.mxu1 %v724_v55  ;;  %1486 = vmatpush.xpose.msra.mxu2 %v724_v55  ;;  %v689_v13 = vld [vmem:[%s2458_s11 + $0x10] sm:$0xff]  ;;  %v714_v18 = vld [vmem:[#allocation10 + $0x18] sm:$0xff]  ;;  %v695_v27 = vld [vmem:[#allocation7] sm:$0xff] }
 0x1f0   : > { %v684_v19 = vld [vmem:[%s2451_s10 + $0x30] sm:$0xff]  ;;  %v690_v20 = vld [vmem:[%s2458_s11 + $0x18] sm:$0xff]  ;;  %v687_v26 = vld [vmem:[%s2458_s11] sm:$0xff] }
 0x1f1   : > { %772 = vperm.xlu0 %2051, %v678_v3   ;;  %v697_v21 = vld [vmem:[#allocation7 + $0x10] sm:$0xff]  ;;  %v696_v23 = vld [vmem:[#allocation7 + $0x8] sm:$0xff]  ;;  %v711_v28 = vld [vmem:[#allocation10] sm:$0xff]  ;;  %1527 = vperm.xlu2 %2053, %v687_v26  }
 0x1f2   : > { %732 = vmatpush.xpose.msra.mxu0 %v707_v56  ;;  %1974 = vmatpush.xpose.msra.mxu3 %v707_v56  ;;  %v713_v22 = vld [vmem:[#allocation10 + $0x10] sm:$0xff]  ;;  %v712_v24 = vld [vmem:[#allocation10 + $0x8] sm:$0xff]  ;;  %v660_v29 = vld [vmem:[%s2467_s12] sm:$0xff] }
 0x1f3   : > { %1129 = vmatpush.xpose.msra.mxu1 %v723_v57  ;;  %1487 = vmatpush.xpose.msra.mxu2 %v723_v57  ;;  %v685_v25 = vld [vmem:[%s2451_s10 + $0x38] sm:$0xff]  ;;  %v666_v30 = vld [vmem:[%s2467_s12 + $0x30] sm:$0xff]  ;;  %v669_v31 = vld [vmem:[%s2472_s14] sm:$0xff] }
 0x1f4   : > { %787 = vperm.xlu1 %2052, %v681_v7   ;;  %v694_v33 = vld [vmem:[%s2458_s11 + $0x38] sm:$0xff]  ;;  %v692_v34 = vld [vmem:[%s2458_s11 + $0x28] sm:$0xff]  ;;  %v662_v39 = vld [vmem:[%s2467_s12 + $0x10] sm:$0xff] }
 0x1f5   : > { %v688_v35 = vld [vmem:[%s2458_s11 + $0x8] sm:$0xff]  ;;  %v667_v36 = vld [vmem:[%s2467_s12 + $0x38] sm:$0xff]  ;;  %v671_v40 = vld [vmem:[%s2472_s14 + $0x10] sm:$0xff] }
 0x1f6   : > { %733 = vmatpush.xpose.msra.mxu0 %v706_v58  ;;  %1975 = vmatpush.xpose.msra.mxu3 %v706_v58  ;;  %v661_v32 = vld [vmem:[%s2467_s12 + $0x8] sm:$0xff]  ;;  %v691_v41 = vld [vmem:[%s2458_s11 + $0x20] sm:$0xff]  ;;  %v663_v42 = vld [vmem:[%s2467_s12 + $0x18] sm:$0xff] }
 0x1f7   : > { %1130 = vmatpush.xpose.msra.mxu1 %v722_v59  ;;  %1488 = vmatpush.xpose.msra.mxu2 %v722_v59  ;;  %v670_v37 = vld [vmem:[%s2472_s14 + $0x8] sm:$0xff]  ;;  %v672_v43 = vld [vmem:[%s2472_s14 + $0x18] sm:$0xff]  ;;  %v693_v44 = vld [vmem:[%s2458_s11 + $0x30] sm:$0xff] }
 0x1f8   : > { %v683_v38 = vld [vmem:[%s2451_s10 + $0x28] sm:$0xff]  ;;  %v664_v45 = vld [vmem:[%s2467_s12 + $0x20] sm:$0xff]  ;;  %v675_v51 = vld [vmem:[%s2472_s14 + $0x30] sm:$0xff] }
 0x1f9   : > { %777 = vperm.xlu0 %2051, %v679_v8   ;;  %1532 = vperm.xlu2 %2053, %v688_v35   ;;  %v673_v47 = vld [vmem:[%s2472_s14 + $0x20] sm:$0xff]  ;;  %v665_v48 = vld [vmem:[%s2467_s12 + $0x28] sm:$0xff]  ;;  %v676_v52 = vld [vmem:[%s2472_s14 + $0x38] sm:$0xff] }
 0x1fa   : > { %734 = vmatpush.xpose.msra.mxu0 %v705_v61  ;;  %1976 = vmatpush.xpose.msra.mxu3 %v705_v61  ;;  %v674_v49 = vld [vmem:[%s2472_s14 + $0x28] sm:$0xff]  ;;  %v2500_v55 = vld [vmem:[#allocation6] ss:$0 sm:$0xff] }
 0x1fb   : > { %1131 = vmatpush.xpose.msra.mxu1 %v721_v62  ;;  %1489 = vmatpush.xpose.msra.mxu2 %v721_v62  ;;  %v2510_v62 = vld [vmem:[#allocation5] ss:$0 sm:$0xff] }
 0x1fc   : > { %1537 = vperm.xlu1 %2052, %v689_v13  }
 0x1fe   : > { %735 = vmatpush.xpose.msra.mxu0 %v704_v63  ;;  %1977 = vmatpush.xpose.msra.mxu3 %v704_v63 }
 0x1ff   : > { %1132 = vmatpush.xpose.msra.mxu1 %v720_v60  ;;  %1490 = vmatpush.xpose.msra.mxu2 %v720_v60 }
 0x201   : > { %792 = vperm.xlu0 %2051, %v682_v14   ;;  %797 = vperm.xlu2 %2053, %v683_v38  }
 0x202   : > { %736 = vmatpush.xpose.msra.mxu0 %v703_v4  ;;  %1978 = vmatpush.xpose.msra.mxu3 %v703_v4 }
 0x203   : > { %1133 = vmatpush.xpose.msra.mxu1 %v719_v5  ;;  %1491 = vmatpush.xpose.msra.mxu2 %v719_v5  ;;  %v2513_v5 = vstv %s657_s15 }
 0x204   : > { %802 = vperm.xlu1 %2052, %v684_v19  }
 0x206   : > { %737 = vmatpush.xpose.msra.mxu0 %v702_v6  ;;  %1979 = vmatpush.xpose.msra.mxu3 %v702_v6 }
 0x207   : > { %1134 = vmatpush.xpose.msra.mxu1 %v718_v2  ;;  %1492 = vmatpush.xpose.msra.mxu2 %v718_v2 }
 0x209   : > { %1542 = vperm.xlu0 %2051, %v690_v20   ;;  %1547 = vperm.xlu2 %2053, %v691_v41  }
 0x20a   : > { %738 = vmatpush.xpose.msra.mxu0 %v701_v9  ;;  %1980 = vmatpush.xpose.msra.mxu3 %v701_v9 }
 0x20b   : > { %1135 = vmatpush.xpose.msra.mxu1 %v717_v10  ;;  %1493 = vmatpush.xpose.msra.mxu2 %v717_v10 }
 0x20c   : > { %1552 = vperm.xlu1 %2052, %v692_v34  }
 0x20e   : > { %739 = vmatpush.xpose.msra.mxu0 %v700_v11  ;;  %1981 = vmatpush.xpose.msra.mxu3 %v700_v11 }
 0x20f   : > { %1136 = vmatpush.xpose.msra.mxu1 %v716_v12  ;;  %1494 = vmatpush.xpose.msra.mxu2 %v716_v12 }
 0x211   : > { %807 = vperm.xlu0 %2051, %v685_v25   ;;  %1557 = vperm.xlu2 %2053, %v693_v44  }
 0x212   : > { %740 = vmatpush.xpose.msra.mxu0 %v699_v15  ;;  %1982 = vmatpush.xpose.msra.mxu3 %v699_v15 }
 0x213   : > { %1137 = vmatpush.xpose.msra.mxu1 %v715_v16  ;;  %1495 = vmatpush.xpose.msra.mxu2 %v715_v16 }
 0x216   : > { %741 = vmatpush.xpose.msra.mxu0 %v698_v17  ;;  %1983 = vmatpush.xpose.msra.mxu3 %v698_v17 }
 0x217   : > { %1138 = vmatpush.xpose.msra.mxu1 %v714_v18  ;;  %1496 = vmatpush.xpose.msra.mxu2 %v714_v18 }
 0x219   : > { %1562 = vperm.xlu0 %2051, %v694_v33  }
 0x21a   : > { %742 = vmatpush.xpose.msra.mxu0 %v697_v21  ;;  %1984 = vmatpush.xpose.msra.mxu3 %v697_v21 }
 0x21b   : > { %1139 = vmatpush.xpose.msra.mxu1 %v713_v22  ;;  %1497 = vmatpush.xpose.msra.mxu2 %v713_v22 }
 0x21e   : > { %743 = vmatpush.xpose.msra.mxu0 %v696_v23  ;;  %1985 = vmatpush.xpose.msra.mxu3 %v696_v23 }
 0x21f   : > { %1140 = vmatpush.xpose.msra.mxu1 %v712_v24  ;;  %1498 = vmatpush.xpose.msra.mxu2 %v712_v24 }
 0x222   : > { %744 = vmatpush.xpose.msra.mxu0 %v695_v27  ;;  %1986 = vmatpush.xpose.msra.mxu3 %v695_v27 }
 0x223   : > { %1141 = vmatpush.xpose.msra.mxu1 %v711_v28  ;;  %1499 = vmatpush.xpose.msra.mxu2 %v711_v28 }
 0x225   : > { %745 = vmatmul.f32.vlgmr.msra.gmra.mxu0 %v660_v29  ;;  %763 = vmatmul.f32.vlgmr.msra.gmra.mxu3 %v666_v30 }
 0x226   : > { %1142 = vmatmul.f32.vlgmr.msra.gmra.mxu1 %v660_v29  ;;  %1500 = vmatmul.f32.vlgmr.msra.gmra.mxu2 %v669_v31 }
 0x22d   : > { %748 = vmatmul.f32.gmra.mxu0 %v661_v32  ;;  %766 = vmatmul.f32.gmra.mxu3 %v667_v36 }
 0x22e   : > { %1145 = vmatmul.f32.gmra.mxu1 %v661_v32  ;;  %1503 = vmatmul.f32.gmra.mxu2 %v670_v37 }
 0x235   : > { %751 = vmatmul.f32.gmra.mxu0 %v662_v39 }
 0x236   : > { %1148 = vmatmul.f32.gmra.mxu1 %v662_v39  ;;  %1506 = vmatmul.f32.gmra.mxu2 %v671_v40 }
 0x23d   : > { %754 = vmatmul.f32.gmra.mxu0 %v663_v42 }
 0x23e   : > { %1151 = vmatmul.f32.gmra.mxu1 %v663_v42  ;;  %1509 = vmatmul.f32.gmra.mxu2 %v672_v43 }
 0x245   : > { %757 = vmatmul.f32.gmra.mxu0 %v664_v45 }
 0x246   : > { %1154 = vmatmul.f32.gmra.mxu1 %v664_v45  ;;  %1512 = vmatmul.f32.gmra.mxu2 %v673_v47 }
 0x24b   : > { %v1528_v63 = vpop.permute.xlu2 %1527 }
 0x24c   : > { %v1565_v7 = vadd.f32 %v2500_v55, %v1528_v63 }
 0x24d   : > { %760 = vmatmul.f32.gmra.mxu0 %v665_v48 }
 0x24e   : > { %1157 = vmatmul.f32.gmra.mxu1 %v665_v48  ;;  %1515 = vmatmul.f32.gmra.mxu2 %v674_v49 }
 0x253   : > { %v1533_v11 = vpop.permute.xlu2 %1532 }
 0x254   : > { %v1566_v25 = vadd.f32 %v2500_v55, %v1533_v11 }
 0x256   : > { %1160 = vmatmul.f32.gmra.mxu1 %v666_v30  ;;  %1518 = vmatmul.f32.gmra.mxu2 %v675_v51 }
 0x25b   : > { %v798_v35 = vpop.permute.xlu2 %797 }
 0x25e   : > { %1163 = vmatmul.f32.gmra.mxu1 %v667_v36  ;;  %1521 = vmatmul.f32.gmra.mxu2 %v676_v52  ;;  %v2494_v46 = vpop.permute.xlu1 %782 }
 0x25f   : > { %v815_v27 = vadd.f32 %v2510_v62, %v2494_v46 }
 0x263   : > { %v773_v53 = vpop.permute.xlu0 %772 }
 0x264   : > { %v813_v60 = vadd.f32 %v2510_v62, %v773_v53  ;;  %v1170_v40 = vadd.f32 %v2500_v55, %v773_v53 }
 0x266   : > { %v2496_v54 = vpop.permute.xlu1 %787 }
 0x267   : > { %v816_v51 = vadd.f32 %v2510_v62, %v2496_v54 }
 0x26b   : > { %v2498_v50 = vpop.permute.xlu0 %777 }
 0x26c   : > { %v814_v9 = vadd.f32 %v2510_v62, %v2498_v50  ;;  %v1171_v52 = vadd.f32 %v2500_v55, %v2498_v50 }
 0x26e   : > { %v1538_v56 = vpop.permute.xlu1 %1537 }
 0x26f   : > { %v2503_v57 = vadd.f32 %v2500_v55, %v1538_v56 }
 0x273   : > { %v2505_v58 = vpop.permute.xlu0 %792 }
 0x274   : > { %v817_v11 = vadd.f32 %v2510_v62, %v2505_v58 }
 0x276   : > { %v2515_v6 = vpop.permute.xlu1 %802 }
 0x277   : > { %v819_v12 = vadd.f32 %v2510_v62, %v2515_v6 }
 0x27b   : > { %v1543_v59 = vpop.permute.xlu0 %1542 }
 0x27c   : > { %v2508_v61 = vadd.f32 %v2500_v55, %v1543_v59 }
 0x283   : > { %v808_v37 = vpop.permute.xlu0 %807 }
 0x284   : > { %v820_v47 = vadd.f32 %v2510_v62, %v808_v37 }
 0x2a2   : > { %v746_v0 = vpop.f32.mrf.mxu0 }
 0x2a3   : > { %v821_v1 = vmul.f32 2.0, %v746_v0  ;;  %v1143_v3 = vpop.f32.mrf.mxu1 }
 0x2a4   : > { %v1178_v41 = vmul.f32 2.0, %v1143_v3 }
 0x2a5   : > { %v829_v4 = vsub.f32 %v813_v60, %v821_v1  ;;  %v1173_v1 = vadd.f32 %v2500_v55, %v2496_v54 }
 0x2a6   : > { %v1186_v56 = vsub.f32 %v1170_v40, %v1178_v41 }
 0x2a7   : > { %v837_v2 = vmax.f32 %v829_v4, 0.0 }
 0x2a8   : > { %v764_v8 = vpop.f32.mrf.mxu3  ;;  %v1194_v54 = vmax.f32 %v1186_v56, 0.0 }
 0x2a9   : > { %v846_v10 = vmul.f32 %v2513_v5, %v837_v2  ;;  %v827_v13 = vmul.f32 2.0, %v764_v8  ;;  %v1501_v14 = vpop.f32.mrf.mxu2 }
 0x2aa   : > { %v1573_v15 = vmul.f32 2.0, %v1501_v14  ;;  %v749_v16 = vpop.f32.mrf.mxu0 }
 0x2ab   : > { %v822_v17 = vmul.f32 2.0, %v749_v16  ;;  %v1146_v18 = vpop.f32.mrf.mxu1  ;;  %v854_v20 = vmul.f32 1.442695, %v846_v10  ;;  %v835_v21 = vsub.f32 %v819_v12, %v827_v13  ;;  %v1172_v10 = vadd.f32 %v2500_v55, %v2494_v46 }
 0x2ac   : > { %v1581_v19 = vsub.f32 %v1565_v7, %v1573_v15  ;;  %v1179_v63 = vmul.f32 2.0, %v1146_v18 }
 0x2ad   : > { %v830_v22 = vsub.f32 %v814_v9, %v822_v17  ;;  %2056 = vpow2.f32 %v854_v20  ;;  %v843_v28 = vmax.f32 %v835_v21, 0.0  ;;  %v1548_v17 = vpop.permute.xlu2 %1547  ;;  %v1174_v20 = vadd.f32 %v2500_v55, %v2505_v58 }
 0x2ae   : > { %v1589_v23 = vmax.f32 %v1581_v19, 0.0  ;;  %v1187_v14 = vsub.f32 %v1171_v52, %v1179_v63  ;;  %v1553_v63 = vpop.permute.xlu1 %1552 }
 0x2af   : > { %v838_v24 = vmax.f32 %v830_v22, 0.0  ;;  %v852_v42 = vmul.f32 %v2513_v5, %v843_v28  ;;  %v2570_v28 = vadd.f32 %v2500_v55, %v798_v35 }
 0x2b0   : > { %v2525_v26 = vmul.f32 %v1589_v23, %v2513_v5  ;;  %v767_v38 = vpop.f32.mrf.mxu3  ;;  %v2563_v23 = vadd.f32 %v2510_v62, %v798_v35  ;;  %v1195_v58 = vmax.f32 %v1187_v14, 0.0 }
 0x2b1   : > { %v847_v29 = vmul.f32 %v2513_v5, %v838_v24  ;;  %v1504_v30 = vpop.f32.mrf.mxu2  ;;  %v828_v48 = vmul.f32 2.0, %v767_v38  ;;  %v866_v59 = vmul.f32 1.442695, %v852_v42 }
 0x2b2   : > { %v1574_v31 = vmul.f32 2.0, %v1504_v30  ;;  %v752_v33 = vpop.f32.mrf.mxu0  ;;  %v1203_v52 = vmul.f32 %v1195_v58, %v2513_v5 }
 0x2b3   : > { %v856_v34 = vmul.f32 1.442695, %v847_v29  ;;  %v823_v32 = vmul.f32 2.0, %v752_v33  ;;  %v1149_v36 = vpop.f32.mrf.mxu1  ;;  %v2532_v45 = vpop.eup %2056  ;;  %v836_v2 = vsub.f32 %v820_v47, %v828_v48 }
 0x2b4   : > { %v1582_v39 = vsub.f32 %v1566_v25, %v1574_v31  ;;  %v1180_v16 = vmul.f32 2.0, %v1149_v36  ;;  %v1563_v29 = vpop.permute.xlu0 %1562  ;;  %vm893_vm7 = vcmp.eq.f32.partialorder %v2532_v45, inf  ;;  %vm895_vm8 = vcmp.eq.f32.partialorder %v2532_v45, 0.0 }
 0x2b5   : > { %v831_v43 = vsub.f32 %v815_v27, %v823_v32  ;;  %2058 = vpow2.f32 %v856_v34  ;;  %v844_v21 = vmax.f32 %v836_v2, 0.0  ;;  %v1202_v27 = vmul.f32 %v1194_v54, %v2513_v5 }
 0x2b6   : > { %v1590_v44 = vmax.f32 %v1582_v39, 0.0  ;;  %2060 = vrsqrt.f32 %v2532_v45  ;;  %v1188_v33 = vsub.f32 %v1172_v10, %v1180_v16 }
 0x2b7   : > { %v839_v49 = vmax.f32 %v831_v43, 0.0  ;;  %2062 = vpow2.f32 %v866_v59  ;;  %v853_v38 = vmul.f32 %v2513_v5, %v844_v21  ;;  %v2588_v43 = vadd.f32 %v2500_v55, %v1563_v29 }
 0x2b8   : > { %v2540_v53 = vmul.f32 %v1590_v44, %v2513_v5  ;;  %v1196_v59 = vmax.f32 %v1188_v33, 0.0 }
 0x2b9   : > { %v848_v60 = vmul.f32 %v2513_v5, %v839_v49  ;;  %v1507_v0 = vpop.f32.mrf.mxu2  ;;  %v1210_v49 = vmul.f32 1.442695, %v1202_v27 }
 0x2ba   : > { %v1575_v3 = vmul.f32 2.0, %v1507_v0  ;;  %v755_v4 = vpop.f32.mrf.mxu0  ;;  %v1607_v58 = vmul.f32 1.442695, %v2540_v53 }
 0x2bb   : > { %v858_v7 = vmul.f32 1.442695, %v848_v60  ;;  %v824_v8 = vmul.f32 2.0, %v755_v4  ;;  %v1152_v50 = vpop.f32.mrf.mxu1  ;;  %v2546_v9 = vpop.eup %2058 }
 0x2bc   : > { %v1583_v12 = vsub.f32 %v2503_v57, %v1575_v3  ;;  %v1181_v13 = vmul.f32 2.0, %v1152_v50  ;;  %v2556_v22 = vpop.eup %2060  ;;  %v2560_v57 = vadd.f32 %v2500_v55, %v2515_v6  ;;  %v2574_v6 = vadd.f32 %v2500_v55, %v808_v37 }
 0x2bd   : > { %v832_v15 = vsub.f32 %v816_v51, %v824_v8  ;;  %2064 = vpow2.f32 %v858_v7  ;;  %v2579_v36 = vpop.eup %2062  ;;  %v887_v41 = vmul.f32 %v2556_v22, %v2532_v45  ;;  %v1569_v37 = vadd.f32 %v2500_v55, %v1548_v17 }
 0x2be   : > { %v1591_v18 = vmax.f32 %v1583_v12, 0.0  ;;  %v1189_v19 = vsub.f32 %v1173_v1, %v1181_v13  ;;  %2066 = vrsqrt.f32 %v2546_v9  ;;  %v1605_v51 = vmul.f32 1.442695, %v2525_v26 }
 0x2bf   : > { %v840_v46 = vmax.f32 %v832_v15, 0.0  ;;  %v868_v1 = vmul.f32 1.442695, %v853_v38  ;;  %v888_v4 = vmul.f32 %v2556_v22, %v887_v41  ;;  %v1212_v8 = vmul.f32 1.442695, %v1203_v52 }
 0x2c0   : > { %v2566_v24 = vmul.f32 %v1591_v18, %v2513_v5  ;;  %v1197_v25 = vmax.f32 %v1189_v19, 0.0  ;;  %v2604_v50 = vadd.f32 %v2500_v55, %v1553_v63  ;;  %v2609_v12 = vmul.f32 %v2532_v45, %v2532_v45 }
 0x2c1   : > { %v849_v30 = vmul.f32 %v2513_v5, %v840_v46  ;;  %v1510_v31 = vpop.f32.mrf.mxu2  ;;  %v1204_v13 = vmul.f32 %v1196_v59, %v2513_v5  ;;  %v889_v46 = vmul.f32 0.5, %v888_v4  ;;  %v2637_v53 = vmul.f32 %v2546_v9, %v2546_v9 }
 0x2c2   : > { %v2577_v62 = vmul.f32 %v1197_v25, %v2513_v5  ;;  %v1576_v34 = vmul.f32 2.0, %v1510_v31  ;;  %v758_v32 = vpop.f32.mrf.mxu0  ;;  %vm905_vm9 = vcmp.eq.f32.partialorder %v2546_v9, inf  ;;  %vm907_vm10 = vcmp.eq.f32.partialorder %v2546_v9, 0.0 }
 0x2c3   : > { %v860_v39 = vmul.f32 1.442695, %v849_v30  ;;  %v825_v35 = vmul.f32 2.0, %v758_v32  ;;  %v1155_v40 = vpop.f32.mrf.mxu1  ;;  %v2584_v42 = vpop.eup %2064  ;;  %v1214_v31 = vmul.f32 1.442695, %v1204_v13  ;;  %v2666_v4 = vmul.f32 %v2637_v53, %v2637_v53 }
 0x2c4   : > { %v1584_v44 = vsub.f32 %v2508_v61, %v1576_v34  ;;  %v1182_v47 = vmul.f32 2.0, %v1155_v40  ;;  %v2591_v48 = vpop.eup %2066  ;;  %v1558_v61 = vpop.permute.xlu2 %1557  ;;  %v2633_v34 = vmul.f32 %v2579_v36, %v2579_v36  ;;  %v890_v40 = vsub.f32 1.5, %v889_v46 }
 0x2c5   : > { %v833_v56 = vsub.f32 %v817_v11, %v825_v35  ;;  %2068 = vpow2.f32 %v860_v39  ;;  %v899_v26 = vmul.f32 %v2591_v48, %v2546_v9  ;;  %v2616_v16 = vadd.f32 %v2500_v55, %v1558_v61 }
 0x2c6   : > { %v1592_v60 = vmax.f32 %v1584_v44, 0.0  ;;  %v1190_v0 = vsub.f32 %v1174_v20, %v1182_v47  ;;  %2070 = vrsqrt.f32 %v2584_v42  ;;  %v2627_v55 = vmul.f32 %v2609_v12, %v2609_v12 }
 0x2c7   : > { %v841_v3 = vmax.f32 %v833_v56, 0.0  ;;  %2072 = vrsqrt.f32 %v2579_v36  ;;  %v900_v25 = vmul.f32 %v2591_v48, %v899_v26  ;;  %v1609_v56 = vmul.f32 1.442695, %v2566_v24 }
 0x2c8   : > { %v2598_v2 = vmul.f32 %v1592_v60, %v2513_v5  ;;  %v1198_v7 = vmax.f32 %v1190_v0, 0.0  ;;  %2074 = vpow2.f32 %v1210_v49  ;;  %v896_v49 = vand.u32 2147483648, %v2532_v45 }
 0x2c9   : > { %v850_v10 = vmul.f32 %v2513_v5, %v841_v3  ;;  %v1513_v11 = vpop.f32.mrf.mxu2  ;;  %2076 = vpow2.f32 %v868_v1  ;;  %v901_v41 = vmul.f32 0.5, %v900_v25  ;;  %v2658_v63 = vmul.f32 %v2633_v34, %v2633_v34 }
 0x2ca   : > { %v2613_v54 = vmul.f32 %v1198_v7, %v2513_v5  ;;  %v1577_v14 = vmul.f32 2.0, %v1513_v11  ;;  %v761_v15 = vpop.f32.mrf.mxu0  ;;  %2078 = vpow2.f32 %v1605_v51  ;;  %v891_v7 = vmul.f32 %v2556_v22, %v890_v40 }
 0x2cb   : > { %v862_v17 = vmul.f32 1.442695, %v850_v10  ;;  %v826_v18 = vmul.f32 2.0, %v761_v15  ;;  %v2618_v19 = vpop.eup %2068  ;;  %v1158_v21 = vpop.f32.mrf.mxu1  ;;  %2080 = vpow2.f32 %v1212_v8  ;;  %v902_v26 = vsub.f32 1.5, %v901_v41 }
 0x2cc   : > { %v1585_v20 = vsub.f32 %v1569_v37, %v1577_v14  ;;  %v2621_v27 = vpop.eup %2070  ;;  %v1183_v38 = vmul.f32 2.0, %v1158_v21  ;;  %v1216_v8 = vmul.f32 1.442695, %v2577_v62  ;;  %v1611_v15 = vmul.f32 1.442695, %v2598_v2 }
 0x2cd   : > { %v834_v29 = vsub.f32 %v2563_v23, %v826_v18  ;;  %v2629_v30 = vpop.eup %2072  ;;  %2082 = vpow2.f32 %v862_v17  ;;  %v911_v23 = vmul.f32 %v2621_v27, %v2584_v42  ;;  %v2693_v21 = vmul.f32 %v2584_v42, %v2584_v42 }
 0x2ce   : > { %v1593_v33 = vmax.f32 %v1585_v20, 0.0  ;;  %v2641_v39 = vpop.eup %2074  ;;  %2084 = vrsqrt.f32 %v2618_v19  ;;  %v959_v51 = vmul.f32 %v2629_v30, %v2579_v36  ;;  %v1191_v3 = vsub.f32 %v2570_v28, %v1183_v38 }
 0x2cf   : > { %v842_v32 = vmax.f32 %v834_v29, 0.0  ;;  %v2647_v37 = vpop.eup %2076  ;;  %2086 = vpow2.f32 %v1607_v58  ;;  %v912_v60 = vmul.f32 %v2621_v27, %v911_v23  ;;  %v892_v46 = vmul.f32 %v2532_v45, %v891_v7 }
 0x2d0   : > { %v2644_v35 = vmul.f32 %v1593_v33, %v2513_v5  ;;  %v2653_v52 = vpop.eup %2078  ;;  %2088 = vpow2.f32 %v1214_v31  ;;  %v2677_v28 = vmul.f32 %v2647_v37, %v2647_v37  ;;  %v960_v10 = vmul.f32 %v2629_v30, %v959_v51 }
 0x2d1   : > { %v851_v44 = vmul.f32 %v2513_v5, %v842_v32  ;;  %v1516_v47 = vpop.f32.mrf.mxu2  ;;  %3552 = vst [vmem:[#allocation16_spill] sm:$0xff] %v2653_v52  ;;  %v2661_v0 = vpop.eup %2080  ;;  %2090 = vrsqrt.f32 %v2647_v37  ;;  %v913_v22 = vmul.f32 0.5, %v912_v60  ;;  %v1199_v62 = vmax.f32 %v1191_v3, 0.0 }
 0x2d2   : > { %v1578_v59 = vmul.f32 2.0, %v1516_v47  ;;  %v903_v25 = vmul.f32 %v2591_v48, %v902_v26  ;;  %v2701_v29 = vmul.f32 %v2677_v28, %v2677_v28  ;;  %v961_v33 = vmul.f32 0.5, %v960_v10 }
 0x2d3   : > { %v864_v1 = vmul.f32 1.442695, %v851_v44  ;;  %v2669_v24 = vpop.eup %2082  ;;  %v1161_v20 = vpop.f32.mrf.mxu1  ;;  %v1218_v38 = vmul.f32 1.442695, %v2613_v54  ;;  %v914_v40 = vsub.f32 1.5, %v913_v22  ;;  %v920_v48 = vand.u32 2147483648, %v2584_v42 }
 0x2d4   : > { %v1586_v61 = vsub.f32 %v2604_v50, %v1578_v59  ;;  %v2085_v11 = vpop.eup %2084  ;;  %v908_v50 = vand.u32 2147483648, %v2546_v9  ;;  %v1207_v44 = vmul.f32 %v1199_v62, %v2513_v5  ;;  %v1184_v47 = vmul.f32 2.0, %v1161_v20 }
 0x2d5   : > { %2092 = vpow2.f32 %v864_v1  ;;  %v2682_v14 = vpop.eup %2086  ;;  %v923_v17 = vmul.f32 %v2085_v11, %v2618_v19  ;;  %v2716_v54 = vmul.f32 %v2618_v19, %v2618_v19  ;;  %v894_v60 = vsel %vm893_vm7, %v2532_v45, %v892_v46 }
 0x2d6   : > { %2094 = vpow2.f32 %v1609_v56  ;;  %v1594_v13 = vmax.f32 %v1586_v61, 0.0  ;;  %3553 = vst [vmem:[#allocation17_spill] sm:$0xff] %v2682_v14  ;;  %v2697_v2 = vpop.eup %2088  ;;  %v904_v1 = vmul.f32 %v2546_v9, %v903_v25  ;;  %v1613_v61 = vmul.f32 1.442695, %v2644_v35 }
 0x2d7   : > { %2096 = vrsqrt.f32 %v2669_v24  ;;  %v924_v31 = vmul.f32 %v2085_v11, %v923_v17  ;;  %v2703_v32 = vpop.eup %2090  ;;  %vm917_vm11 = vcmp.eq.f32.partialorder %v2584_v42, inf  ;;  %v962_v26 = vsub.f32 1.5, %v961_v33 }
 0x2d8   : > { %v2689_v18 = vmul.f32 %v1594_v13, %v2513_v5  ;;  %2098 = vpow2.f32 %v1216_v8  ;;  %v915_v8 = vmul.f32 %v2621_v27, %v914_v40  ;;  %v1220_v22 = vmul.f32 1.442695, %v1207_v44 }
 0x2d9   : > { %v1519_v58 = vpop.f32.mrf.mxu2  ;;  %2100 = vpow2.f32 %v1611_v15  ;;  %v925_v51 = vmul.f32 0.5, %v924_v31  ;;  %v1192_v15 = vsub.f32 %v2560_v57, %v1184_v47  ;;  %v2734_v35 = vsel %vm895_vm8, %v896_v49, %v894_v60 }
 0x2da   : > { %v1579_v23 = vmul.f32 2.0, %v1519_v58  ;;  %vm929_vm12 = vcmp.eq.f32.partialorder %v2618_v19, inf  ;;  %v906_v27 = vsel %vm905_vm9, %v2546_v9, %v904_v1  ;;  %vm919_vm13 = vcmp.eq.f32.partialorder %v2584_v42, 0.0 }
 0x2db   : > { %v2708_v41 = vpop.eup %2092  ;;  %v926_v7 = vsub.f32 1.5, %v925_v51  ;;  %v932_v49 = vand.u32 2147483648, %v2618_v19  ;;  %v963_v25 = vmul.f32 %v2629_v30, %v962_v26  ;;  %v971_v58 = vmul.f32 %v2703_v32, %v2647_v37  ;;  %v1164_v44 = vpop.f32.mrf.mxu1 }
 0x2dc   : > { %v2711_v56 = vpop.eup %2094  ;;  %v1587_v59 = vsub.f32 %v2616_v16, %v1579_v23  ;;  %2102 = vrsqrt.f32 %v2708_v41  ;;  %v2752_v33 = vmul.f32 %v2669_v24, %v2669_v24  ;;  %vm931_vm14 = vcmp.eq.f32.partialorder %v2618_v19, 0.0 }
 0x2dd   : > { %3554 = vst [vmem:[#allocation18_spill] sm:$0xff] %v2711_v56  ;;  %v2097_v3 = vpop.eup %2096  ;;  %2104 = vpow2.f32 %v1218_v38  ;;  %v927_v17 = vmul.f32 %v2085_v11, %v926_v7  ;;  %v916_v11 = vmul.f32 %v2584_v42, %v915_v8  ;;  %v1200_v40 = vmax.f32 %v1192_v15, 0.0 }
 0x2de   : > { %v1595_v16 = vmax.f32 %v1587_v59, 0.0  ;;  %v935_v10 = vmul.f32 %v2097_v3, %v2669_v24  ;;  %v2727_v13 = vpop.eup %2098  ;;  %2106 = vpow2.f32 %v1613_v61  ;;  %v2760_v30 = vsel %vm907_vm10, %v908_v50, %v906_v27 }
 0x2df   : > { %3555 = vst [vmem:[#allocation19_spill] sm:$0xff] %v2727_v13  ;;  %v2743_v46 = vpop.eup %2100  ;;  %2108 = vpow2.f32 %v1220_v22  ;;  %v972_v47 = vmul.f32 %v2703_v32, %v971_v58  ;;  %v928_v60 = vmul.f32 %v2618_v19, %v927_v17  ;;  %vm941_vm15 = vcmp.eq.f32.partialorder %v2669_v24, inf }
 0x2e0   : > { %v2738_v62 = vmul.f32 %v1595_v16, %v2513_v5  ;;  %v936_v20 = vmul.f32 %v2097_v3, %v935_v10  ;;  %3556 = vst [vmem:[#allocation20_spill] sm:$0xff] %v2743_v46  ;;  %vm943_vm0 = vcmp.eq.f32.partialorder %v2669_v24, 0.0  ;;  %v964_v7 = vmul.f32 %v2579_v36, %v963_v25 }
 0x2e1   : > { %v1522_v57 = vpop.f32.mrf.mxu2  ;;  %v973_v26 = vmul.f32 0.5, %v972_v47  ;;  %v1185_v50 = vmul.f32 2.0, %v1164_v44  ;;  %v918_v8 = vsel %vm917_vm11, %v2584_v42, %v916_v11  ;;  %vm965_vm1 = vcmp.eq.f32.partialorder %v2579_v36, inf }
 0x2e2   : > { %v1580_v31 = vmul.f32 2.0, %v1522_v57  ;;  %v937_v38 = vmul.f32 0.5, %v936_v20  ;;  %v2103_v23 = vpop.eup %2102  ;;  %vm967_vm2 = vcmp.eq.f32.partialorder %v2579_v36, 0.0  ;;  %v930_v17 = vsel %vm929_vm12, %v2618_v19, %v928_v60 }
 0x2e3   : > { %v2763_v51 = vpop.eup %2104  ;;  %v947_v61 = vmul.f32 %v2103_v23, %v2708_v41  ;;  %v974_v15 = vsub.f32 1.5, %v973_v26  ;;  %v968_v20 = vand.u32 2147483648, %v2579_v36  ;;  %2110 = vrsqrt.f32 %v2734_v35 }
 0x2e4   : > { %3557 = vst [vmem:[#allocation21_spill] sm:$0xff] %v2763_v51  ;;  %v1588_v59 = vsub.f32 %v2588_v43, %v1580_v31  ;;  %v938_v1 = vsub.f32 1.5, %v937_v38  ;;  %v2775_v43 = vpop.eup %2106  ;;  %v966_v58 = vsel %vm965_vm1, %v2579_v36, %v964_v7  ;;  %v1193_v11 = vsub.f32 %v2574_v6, %v1185_v50 }
 0x2e5   : > { %3558 = vst [vmem:[#allocation22_spill] sm:$0xff] %v2775_v43  ;;  %v948_v22 = vmul.f32 %v2103_v23, %v947_v61  ;;  %v2786_v57 = vpop.eup %2108  ;;  %v975_v31 = vmul.f32 %v2703_v32, %v974_v15  ;;  %v2796_v38 = vsel %vm919_vm13, %v920_v48, %v918_v8  ;;  %v944_v44 = vand.u32 2147483648, %v2669_v24 }
 0x2e6   : > { %v1596_v16 = vmax.f32 %v1588_v59, 0.0  ;;  %v939_v10 = vmul.f32 %v2097_v3, %v938_v1  ;;  %3560 = vst [vmem:[#allocation24_spill] sm:$0xff] %v2786_v57  ;;  %2112 = vrsqrt.f32 %v2760_v30  ;;  %v2802_v47 = vsel %vm931_vm14, %v932_v49, %v930_v17 }
 0x2e7   : > { %v949_v3 = vmul.f32 0.5, %v948_v22  ;;  %v976_v6 = vmul.f32 %v2647_v37, %v975_v31  ;;  %v1208_v60 = vmul.f32 %v1200_v40, %v2513_v5  ;;  %v2815_v1 = vsel %vm967_vm2, %v968_v20, %v966_v58 }
 0x2e8   : > { %v2779_v27 = vmul.f32 %v1596_v16, %v2513_v5  ;;  %v940_v25 = vmul.f32 %v2669_v24, %v939_v10  ;;  %vm977_vm3 = vcmp.eq.f32.partialorder %v2647_v37, inf  ;;  %v980_v7 = vand.u32 2147483648, %v2647_v37 }
 0x2e9   : > { %v950_v59 = vsub.f32 1.5, %v949_v3  ;;  %v978_v61 = vsel %vm977_vm3, %v2647_v37, %v976_v6  ;;  %2114 = vrsqrt.f32 %v2796_v38  ;;  %v2111_v26 = vpop.eup %2110  ;;  %v1615_v40 = vmul.f32 1.442695, %v2689_v18 }
 0x2ea   : > { %3559 = vst [vmem:[#allocation23_spill] sm:$0xff] %v2779_v27  ;;  %v942_v32 = vsel %vm941_vm15, %v2669_v24, %v940_v25  ;;  %v1201_v50 = vmax.f32 %v1193_v11, 0.0  ;;  %vm979_vm4 = vcmp.eq.f32.partialorder %v2647_v37, 0.0  ;;  %2116 = vrsqrt.f32 %v2802_v47 }
 0x2eb   : > { %v2811_v48 = vsel %vm943_vm0, %v944_v44, %v942_v32  ;;  %v951_v49 = vmul.f32 %v2103_v23, %v950_v59  ;;  %v2825_v8 = vsel %vm979_vm4, %v980_v7, %v978_v61  ;;  %v983_v23 = vmul.f32 %v2111_v26, %v2734_v35 }
 0x2ec   : > { %2118 = vrsqrt.f32 %v2811_v48  ;;  %v2113_v10 = vpop.eup %2112  ;;  %v1222_v22 = vmul.f32 1.442695, %v1208_v60  ;;  %vm953_vm5 = vcmp.eq.f32.partialorder %v2708_v41, inf  ;;  %v956_v15 = vand.u32 2147483648, %v2708_v41 }
 0x2ed   : > { %v952_v16 = vmul.f32 %v2708_v41, %v951_v49  ;;  %2120 = vrsqrt.f32 %v2815_v1  ;;  %vm955_vm6 = vcmp.eq.f32.partialorder %v2708_v41, 0.0  ;;  %v984_v17 = vmul.f32 %v2111_v26, %v983_v23 }
 0x2ee   : > { %v995_v20 = vmul.f32 %v2113_v10, %v2760_v30  ;;  %v2837_v25 = vmul.f32 %v2708_v41, %v2708_v41  ;;  %v2841_v3 = vmul.f32 %v2693_v21, %v2693_v21  ;;  %2122 = vrsqrt.f32 %v2825_v8 }
 0x2ef   : > { %v954_v18 = vsel %vm953_vm5, %v2708_v41, %v952_v16  ;;  %v2115_v31 = vpop.eup %2114  ;;  %v1209_v11 = vmul.f32 %v1201_v50, %v2513_v5  ;;  %v985_v44 = vmul.f32 0.5, %v984_v17  ;;  %v2850_v6 = vmul.f32 %v2716_v54, %v2716_v54 }
 0x2f0   : > { %v2843_v58 = vsel %vm955_vm6, %v956_v15, %v954_v18  ;;  %v996_v32 = vmul.f32 %v2113_v10, %v995_v20  ;;  %v2117_v59 = vpop.eup %2116  ;;  %v2854_v60 = vmul.f32 %v2752_v33, %v2752_v33  ;;  %v1007_v49 = vmul.f32 %v2115_v31, %v2796_v38 }
 0x2f1   : > { %2124 = vrsqrt.f32 %v2843_v58  ;;  %v986_v7 = vsub.f32 1.5, %v985_v44  ;;  %v1019_v50 = vmul.f32 %v2117_v59, %v2802_v47  ;;  %v2859_v23 = vmul.f32 1.442695, %v2738_v62 }
 0x2f2   : > { %2126 = vpow2.f32 %v1615_v40  ;;  %v2119_v61 = vpop.eup %2118  ;;  %v997_v5 = vmul.f32 0.5, %v996_v32  ;;  %v2863_v40 = vmul.f32 %v2837_v25, %v2837_v25  ;;  %v1008_v15 = vmul.f32 %v2115_v31, %v1007_v49 }
 0x2f3   : > { %2128 = vpow2.f32 %v1222_v22  ;;  %v2121_v16 = vpop.eup %2120  ;;  %v1031_v18 = vmul.f32 %v2119_v61, %v2811_v48  ;;  %v2866_v17 = vmul.f32 1.442695, %v1209_v11  ;;  %v1020_v43 = vmul.f32 %v2117_v59, %v1019_v50 }
 0x2f4   : > { %v998_v20 = vsub.f32 1.5, %v997_v5  ;;  %v1055_v22 = vmul.f32 %v2121_v16, %v2815_v1  ;;  %v2869_v44 = vpop.eup %2122  ;;  %vm989_vm7 = vcmp.eq.f32.partialorder %v2734_v35, inf  ;;  %v992_v62 = vand.u32 2147483648, %v2734_v35 }
 0x2f5   : > { %v1009_v32 = vmul.f32 0.5, %v1008_v15  ;;  %v1032_v46 = vmul.f32 %v2119_v61, %v1031_v18  ;;  %v987_v14 = vmul.f32 %v2111_v26, %v986_v7  ;;  %v1021_v49 = vmul.f32 0.5, %v1020_v43 }
 0x2f6   : > { %v999_v52 = vmul.f32 %v2113_v10, %v998_v20  ;;  %v1056_v57 = vmul.f32 %v2121_v16, %v1055_v22  ;;  %v1067_v51 = vmul.f32 %v2869_v44, %v2825_v8  ;;  %vm991_vm8 = vcmp.eq.f32.partialorder %v2734_v35, 0.0 }
 0x2f7   : > { %v2125_v56 = vpop.eup %2124  ;;  %v1010_v11 = vsub.f32 1.5, %v1009_v32  ;;  %v1033_v5 = vmul.f32 0.5, %v1032_v46  ;;  %vm1001_vm9 = vcmp.eq.f32.partialorder %v2760_v30, inf  ;;  %v1004_v26 = vand.u32 2147483648, %v2760_v30 }
 0x2f8   : > { %v2873_v27 = vpop.eup %2126  ;;  %v1043_v50 = vmul.f32 %v2125_v56, %v2843_v58  ;;  %v1022_v10 = vsub.f32 1.5, %v1021_v49  ;;  %v1057_v43 = vmul.f32 0.5, %v1056_v57  ;;  %vm1003_vm10 = vcmp.eq.f32.partialorder %v2760_v30, 0.0 }
 0x2f9   : > { %3561 = vst [vmem:[#allocation25_spill] sm:$0xff] %v2873_v27  ;;  %v2878_v13 = vpop.eup %2128  ;;  %v1011_v7 = vmul.f32 %v2115_v31, %v1010_v11  ;;  %vm1013_vm11 = vcmp.eq.f32.partialorder %v2796_v38, inf  ;;  %v1034_v46 = vsub.f32 1.5, %v1033_v5  ;;  %v988_v18 = vmul.f32 %v987_v14, %v2734_v35 }
 0x2fa   : > { %v1044_v15 = vmul.f32 %v2125_v56, %v1043_v50  ;;  %vm1015_vm12 = vcmp.eq.f32.partialorder %v2796_v38, 0.0  ;;  %v1016_v20 = vand.u32 2147483648, %v2796_v38  ;;  %v1068_v22 = vmul.f32 %v2869_v44, %v1067_v51 }
 0x2fb   : > { %v1000_v32 = vmul.f32 %v999_v52, %v2760_v30  ;;  %v1012_v49 = vmul.f32 %v1011_v7, %v2796_v38  ;;  %v1023_v57 = vmul.f32 %v2117_v59, %v1022_v10  ;;  %vm1025_vm13 = vcmp.eq.f32.partialorder %v2802_v47, inf }
 0x2fc   : > { %v1045_v27 = vmul.f32 0.5, %v1044_v15  ;;  %v1035_v31 = vmul.f32 %v2119_v61, %v1034_v46  ;;  %v1058_v11 = vsub.f32 1.5, %v1057_v43  ;;  %v1069_v5 = vmul.f32 0.5, %v1068_v22 }
 0x2fd   : > { %vm1027_vm14 = vcmp.eq.f32.partialorder %v2802_v47, 0.0  ;;  %v1028_v14 = vand.u32 2147483648, %v2802_v47  ;;  %vm1037_vm15 = vcmp.eq.f32.partialorder %v2811_v48, inf  ;;  %v990_v52 = vsel %vm989_vm7, %v2734_v35, %v988_v18 }
 0x2fe   : > { %v1046_v50 = vsub.f32 1.5, %v1045_v27  ;;  %v1078_v51 = vadd.f32 %v2627_v55, %v2609_v12  ;;  %v1079_v59 = vadd.f32 %v2666_v4, %v2637_v53  ;;  %v1080_v61 = vadd.f32 %v2841_v3, %v2693_v21 }
 0x2ff   : > { %v1002_v10 = vsel %vm1001_vm9, %v2760_v30, %v1000_v32  ;;  %v1014_v27 = vsel %vm1013_vm11, %v2796_v38, %v1012_v49  ;;  %v1024_v43 = vmul.f32 %v1023_v57, %v2802_v47  ;;  %vm1039_vm0 = vcmp.eq.f32.partialorder %v2811_v48, 0.0 }
 0x300   : > { %v1047_v7 = vmul.f32 %v2125_v56, %v1046_v50  ;;  %v1036_v12 = vmul.f32 %v1035_v31, %v2811_v48  ;;  %v1040_v55 = vand.u32 2147483648, %v2811_v48  ;;  %v1059_v53 = vmul.f32 %v2121_v16, %v1058_v11 }
 0x301   : > { %v1070_v4 = vsub.f32 1.5, %v1069_v5  ;;  %v993_v21 = vsel %vm991_vm8, %v992_v62, %v990_v52  ;;  %vm1049_vm1 = vcmp.eq.f32.partialorder %v2843_v58, inf  ;;  %vm1061_vm2 = vcmp.eq.f32.partialorder %v2815_v1, inf }
 0x302   : > { %v1081_v3 = vadd.f32 %v2850_v6, %v2716_v54  ;;  %v1005_v46 = vsel %vm1003_vm10, %v1004_v26, %v1002_v10  ;;  %v1017_v56 = vsel %vm1015_vm12, %v1016_v20, %v1014_v27  ;;  %v1048_v15 = vmul.f32 %v1047_v7, %v2843_v58 }
 0x303   : > { %v1082_v16 = vadd.f32 %v2854_v60, %v2752_v33  ;;  %v1026_v62 = vsel %vm1025_vm13, %v2802_v47, %v1024_v43  ;;  %v1086_v18 = vadd.f32 %v2532_v45, %v1078_v51  ;;  %v1087_v22 = vadd.f32 %v2546_v9, %v1079_v59 }
 0x304   : > { %v1088_v54 = vadd.f32 %v2584_v42, %v1080_v61  ;;  %v1038_v6 = vsel %vm1037_vm15, %v2811_v48, %v1036_v12  ;;  %v1060_v26 = vmul.f32 %v1059_v53, %v2815_v1  ;;  %v1071_v20 = vmul.f32 %v2869_v44, %v1070_v4  ;;  %v3563_v4 = vld [vmem:[#allocation21_spill] sm:$0xff] }
 0x305   : > { %v1083_v33 = vadd.f32 %v2863_v40, %v2837_v25  ;;  %v1089_v60 = vadd.f32 %v2618_v19, %v1081_v3  ;;  %v1094_v32 = vadd.f32 %v1086_v18, %v2734_v35  ;;  %v1095_v45 = vadd.f32 %v1087_v22, %v2760_v30 }
 0x306   : > { %v1096_v9 = vadd.f32 %v1088_v54, %v2796_v38  ;;  %v1029_v42 = vsel %vm1027_vm14, %v1028_v14, %v1026_v62  ;;  %v1050_v49 = vsel %vm1049_vm1, %v2843_v58, %v1048_v15  ;;  %v1084_v44 = vadd.f32 %v2658_v63, %v2633_v34 }
 0x307   : > { %v1090_v25 = vadd.f32 %v2669_v24, %v1082_v16  ;;  %v1097_v19 = vadd.f32 %v1089_v60, %v2802_v47  ;;  %v1102_v40 = vadd.f32 %v1094_v32, %v993_v21  ;;  %v1103_v35 = vadd.f32 %v1095_v45, %v1005_v46 }
 0x308   : > { %v1104_v57 = vadd.f32 %v1096_v9, %v1017_v56  ;;  %v1041_v30 = vsel %vm1039_vm0, %v1040_v55, %v1038_v6  ;;  %vm1051_vm3 = vcmp.eq.f32.partialorder %v2843_v58, 0.0  ;;  %v1052_v38 = vand.u32 2147483648, %v2843_v58  ;;  %v3562_v55 = vld [vmem:[#allocation19_spill] sm:$0xff]  ;;  %v3565_v56 = vld [vmem:[#allocation24_spill] sm:$0xff] }
 0x309   : > { %v1072_v31 = vmul.f32 %v1071_v20, %v2825_v8  ;;  %v1091_v11 = vadd.f32 %v2708_v41, %v1083_v33  ;;  %v1098_v34 = vadd.f32 %v1090_v25, %v2811_v48  ;;  %v1105_v63 = vadd.f32 %v1097_v19, %v1029_v42 }
 0x30a   : > { %v1110_v24 = vadd.f32 %v1103_v35, %v1102_v40  ;;  %2130 = vpow2.f32 %v2859_v23  ;;  %v1053_v47 = vsel %vm1051_vm3, %v1052_v38, %v1050_v49  ;;  %v1062_v5 = vsel %vm1061_vm2, %v2815_v1, %v1060_v26 }
 0x30b   : > { %v1085_v14 = vadd.f32 %v2701_v29, %v2677_v28  ;;  %v1092_v50 = vadd.f32 %v2579_v36, %v1084_v44  ;;  %v1099_v52 = vadd.f32 %v1091_v11, %v2843_v58  ;;  %v1106_v51 = vadd.f32 %v1098_v34, %v1041_v30 }
 0x30c   : > { %v1111_v41 = vadd.f32 %v1110_v24, %v1104_v57  ;;  %2132 = vpow2.f32 %v2866_v17  ;;  %vm1063_vm4 = vcmp.eq.f32.partialorder %v2815_v1, 0.0  ;;  %v1064_v48 = vand.u32 2147483648, %v2815_v1 }
 0x30d   : > { %vm1073_vm5 = vcmp.eq.f32.partialorder %v2825_v8, inf  ;;  %v1107_v59 = vadd.f32 %v1099_v52, %v1053_v47  ;;  %2134 = vrsqrt.f32 %v2641_v39  ;;  %v1076_v36 = vand.u32 2147483648, %v2825_v8 }
 0x30e   : > { %v1074_v23 = vsel %vm1073_vm5, %v2825_v8, %v1072_v31  ;;  %v1112_v61 = vadd.f32 %v1111_v41, %v1105_v63  ;;  %v1065_v28 = vsel %vm1063_vm4, %v1064_v48, %v1062_v5  ;;  %2136 = vrsqrt.f32 %v2661_v0 }
 0x30f   : > { %vm1075_vm6 = vcmp.eq.f32.partialorder %v2825_v8, 0.0  ;;  %v1093_v29 = vadd.f32 %v2647_v37, %v1085_v14  ;;  %v1100_v58 = vadd.f32 %v1092_v50, %v2815_v1  ;;  %2138 = vrsqrt.f32 %v2697_v2  ;;  %v3564_v37 = vld [vmem:[#allocation23_spill] sm:$0xff] }
 0x310   : > { %v1113_v17 = vadd.f32 %v1112_v61, %v1106_v51  ;;  %v2979_v10 = vpop.eup %2130  ;;  %v1077_v27 = vsel %vm1075_vm6, %v1076_v36, %v1074_v23  ;;  %2140 = vrsqrt.f32 %v3562_v55  ;;  %v2988_v3 = vmul.f32 1.442695, %v3564_v37 }
 0x311   : > { %v1101_v43 = vadd.f32 %v1093_v29, %v2825_v8  ;;  %v1108_v7 = vadd.f32 %v1100_v58, %v1065_v28  ;;  %2142 = vrsqrt.f32 %v3563_v4  ;;  %v2993_v8 = vmul.f32 %v2641_v39, %v2641_v39 }
 0x312   : > { %v1114_v12 = vadd.f32 %v1113_v17, %v1107_v59  ;;  %v2984_v53 = vpop.eup %2132  ;;  %2144 = vrsqrt.f32 %v3565_v56  ;;  %v2997_v16 = vmul.f32 %v2661_v0, %v2661_v0  ;;  %v3003_v22 = vmul.f32 %v2697_v2, %v2697_v2 }
 0x313   : > { %v2135_v21 = vpop.eup %2134  ;;  %v1109_v1 = vadd.f32 %v1101_v43, %v1077_v27  ;;  %2146 = vrsqrt.f32 %v2878_v13  ;;  %v3007_v54 = vmul.f32 %v3562_v55, %v3562_v55  ;;  %v3012_v20 = vmul.f32 %v3563_v4, %v3563_v4 }
 0x314   : > { %v1115_v46 = vadd.f32 %v1114_v12, %v1108_v7  ;;  %v2137_v15 = vpop.eup %2136  ;;  %v1243_v62 = vmul.f32 %v2135_v21, %v2641_v39  ;;  %v3016_v33 = vmul.f32 %v3565_v56, %v3565_v56  ;;  %2148 = vrsqrt.f32 %v2984_v53 }
 0x315   : > { %v1255_v6 = vmul.f32 %v2137_v15, %v2661_v0  ;;  %v2139_v26 = vpop.eup %2138  ;;  %v3021_v45 = vmul.f32 %v2878_v13, %v2878_v13  ;;  %vm1249_vm7 = vcmp.eq.f32.partialorder %v2641_v39, inf  ;;  %vm1251_vm8 = vcmp.eq.f32.partialorder %v2641_v39, 0.0 }
 0x316   : > { %v1116_v18 = vadd.f32 %v1115_v46, %v1109_v1  ;;  %v1244_v60 = vmul.f32 %v2135_v21, %v1243_v62  ;;  %v2141_v32 = vpop.eup %2140  ;;  %v1267_v42 = vmul.f32 %v2139_v26, %v2697_v2  ;;  %v1252_v25 = vand.u32 2147483648, %v2641_v39 }
 0x317   : > { %v1256_v9 = vmul.f32 %v2137_v15, %v1255_v6  ;;  %v2143_v49 = vpop.eup %2142  ;;  %vm1261_vm9 = vcmp.eq.f32.partialorder %v2661_v0, inf  ;;  %v1279_v19 = vmul.f32 %v2141_v32, %v3562_v55  ;;  %v1264_v57 = vand.u32 2147483648, %v2661_v0 }
 0x318   : > { %1117 = vadd.xlane.f32.xlu1 %v1116_v18  ;;  %v1245_v44 = vmul.f32 0.5, %v1244_v60  ;;  %v2145_v40 = vpop.eup %2144  ;;  %v1268_v30 = vmul.f32 %v2139_v26, %v1267_v42  ;;  %v1291_v38 = vmul.f32 %v2143_v49, %v3563_v4  ;;  %vm1273_vm10 = vcmp.eq.f32.partialorder %v2697_v2, inf }
 0x319   : > { %v1257_v35 = vmul.f32 0.5, %v1256_v9  ;;  %v2147_v31 = vpop.eup %2146  ;;  %v1276_v34 = vand.u32 2147483648, %v2697_v2  ;;  %v1280_v63 = vmul.f32 %v2141_v32, %v1279_v19  ;;  %v1303_v24 = vmul.f32 %v2145_v40, %v3565_v56 }
 0x31a   : > { %v1246_v11 = vsub.f32 1.5, %v1245_v44  ;;  %vm1263_vm11 = vcmp.eq.f32.partialorder %v2661_v0, 0.0  ;;  %v1269_v5 = vmul.f32 0.5, %v1268_v30  ;;  %v1292_v14 = vmul.f32 %v2143_v49, %v1291_v38  ;;  %v2149_v52 = vpop.eup %2148 }
 0x31b   : > { %v1258_v47 = vsub.f32 1.5, %v1257_v35  ;;  %v1315_v50 = vmul.f32 %v2147_v31, %v2878_v13  ;;  %v1281_v41 = vmul.f32 0.5, %v1280_v63  ;;  %vm1285_vm12 = vcmp.eq.f32.partialorder %v3562_v55, inf }
 0x31c   : > { %v1247_v51 = vmul.f32 %v2135_v21, %v1246_v11  ;;  %v1304_v48 = vmul.f32 %v2145_v40, %v1303_v24  ;;  %v1270_v59 = vsub.f32 1.5, %v1269_v5  ;;  %vm1275_vm13 = vcmp.eq.f32.partialorder %v2697_v2, 0.0 }
 0x31d   : > { %v1259_v23 = vmul.f32 %v2137_v15, %v1258_v47  ;;  %v1293_v61 = vmul.f32 0.5, %v1292_v14  ;;  %v1316_v28 = vmul.f32 %v2147_v31, %v1315_v50  ;;  %v1282_v29 = vsub.f32 1.5, %v1281_v41 }
 0x31e   : > { %v1248_v36 = vmul.f32 %v2641_v39, %v1247_v51  ;;  %vm1287_vm14 = vcmp.eq.f32.partialorder %v3562_v55, 0.0  ;;  %v1305_v58 = vmul.f32 0.5, %v1304_v48  ;;  %v1327_v17 = vmul.f32 %v2149_v52, %v2984_v53 }
 0x31f   : > { %v1260_v27 = vmul.f32 %v2661_v0, %v1259_v23  ;;  %v1271_v43 = vmul.f32 %v2139_v26, %v1270_v59  ;;  %v1294_v7 = vsub.f32 1.5, %v1293_v61  ;;  %v1317_v12 = vmul.f32 0.5, %v1316_v28 }
 0x320   : > { %v1250_v21 = vsel %vm1249_vm7, %v2641_v39, %v1248_v36  ;;  %v1283_v37 = vmul.f32 %v2141_v32, %v1282_v29  ;;  %v1306_v1 = vsub.f32 1.5, %v1305_v58  ;;  %v1328_v46 = vmul.f32 %v2149_v52, %v1327_v17 }
 0x321   : > { %v3047_v15 = vsel %vm1251_vm8, %v1252_v25, %v1250_v21  ;;  %v1262_v62 = vsel %vm1261_vm9, %v2661_v0, %v1260_v27  ;;  %v1272_v18 = vmul.f32 %v2697_v2, %v1271_v43  ;;  %v1295_v6 = vmul.f32 %v2143_v49, %v1294_v7 }
 0x322   : > { %v1284_v26 = vmul.f32 %v3562_v55, %v1283_v37  ;;  %v1288_v60 = vand.u32 2147483648, %v3562_v55  ;;  %v1307_v9 = vmul.f32 %v2145_v40, %v1306_v1  ;;  %v1318_v42 = vsub.f32 1.5, %v1317_v12 }
 0x323   : > { %v1274_v32 = vsel %vm1273_vm10, %v2697_v2, %v1272_v18  ;;  %v1296_v44 = vmul.f32 %v3563_v4, %v1295_v6  ;;  %v1329_v25 = vmul.f32 0.5, %v1328_v46  ;;  %2150 = vrsqrt.f32 %v3047_v15 }
 0x324   : > { %v3062_v19 = vsel %vm1263_vm11, %v1264_v57, %v1262_v62  ;;  %v1286_v49 = vsel %vm1285_vm12, %v3562_v55, %v1284_v26  ;;  %v1308_v40 = vmul.f32 %v3565_v56, %v1307_v9  ;;  %v1319_v35 = vmul.f32 %v2147_v31, %v1318_v42 }
 0x325   : > { %vm1297_vm15 = vcmp.eq.f32.partialorder %v3563_v4, inf  ;;  %vm1299_vm0 = vcmp.eq.f32.partialorder %v3563_v4, 0.0  ;;  %v1300_v30 = vand.u32 2147483648, %v3563_v4  ;;  %v1330_v38 = vsub.f32 1.5, %v1329_v25 }
 0x326   : > { %v3073_v11 = vsel %vm1275_vm13, %v1276_v34, %v1274_v32  ;;  %v1298_v57 = vsel %vm1297_vm15, %v3563_v4, %v1296_v44  ;;  %vm1309_vm1 = vcmp.eq.f32.partialorder %v3565_v56, inf  ;;  %v1320_v63 = vmul.f32 %v2878_v13, %v1319_v35 }
 0x327   : > { %v3080_v31 = vsel %vm1287_vm14, %v1288_v60, %v1286_v49  ;;  %v1310_v24 = vsel %vm1309_vm1, %v3565_v56, %v1308_v40  ;;  %v1331_v47 = vmul.f32 %v2149_v52, %v1330_v38  ;;  %2152 = vrsqrt.f32 %v3062_v19 }
 0x328   : > { %vm1311_vm2 = vcmp.eq.f32.partialorder %v3565_v56, 0.0  ;;  %v1312_v34 = vand.u32 2147483648, %v3565_v56  ;;  %vm1321_vm3 = vcmp.eq.f32.partialorder %v2878_v13, inf  ;;  %v1324_v5 = vand.u32 2147483648, %v2878_v13 }
 0x329   : > { %v2151_v14 = vpop.eup %2150  ;;  %v3090_v50 = vsel %vm1299_vm0, %v1300_v30, %v1298_v57  ;;  %v1322_v51 = vsel %vm1321_vm3, %v2878_v13, %v1320_v63  ;;  %v1332_v41 = vmul.f32 %v2984_v53, %v1331_v47  ;;  %2154 = vrsqrt.f32 %v3073_v11 }
 0x32a   : > { %v3095_v52 = vsel %vm1311_vm2, %v1312_v34, %v1310_v24  ;;  %vm1333_vm4 = vcmp.eq.f32.partialorder %v2984_v53, inf  ;;  %v1339_v48 = vmul.f32 %v2151_v14, %v3047_v15  ;;  %2156 = vrsqrt.f32 %v3080_v31 }
 0x32b   : > { %v3102_v23 = vmul.f32 %v2984_v53, %v2984_v53  ;;  %vm1323_vm5 = vcmp.eq.f32.partialorder %v2878_v13, 0.0  ;;  %v1334_v59 = vsel %vm1333_vm4, %v2984_v53, %v1332_v41  ;;  %v1336_v61 = vand.u32 2147483648, %v2984_v53 }
 0x32c   : > { %v3107_v28 = vsel %vm1323_vm5, %v1324_v5, %v1322_v51  ;;  %vm1335_vm6 = vcmp.eq.f32.partialorder %v2984_v53, 0.0  ;;  %v1340_v36 = vmul.f32 %v2151_v14, %v1339_v48  ;;  %2158 = vrsqrt.f32 %v3090_v50 }
 0x32d   : > { %v2153_v29 = vpop.eup %2152  ;;  %v1234_v58 = vmul.f32 %v2993_v8, %v2993_v8  ;;  %v1235_v17 = vmul.f32 %v2997_v16, %v2997_v16  ;;  %v3115_v27 = vsel %vm1335_vm6, %v1336_v61, %v1334_v59  ;;  %2160 = vrsqrt.f32 %v3095_v52 }
 0x32e   : > { %v1236_v43 = vmul.f32 %v3003_v22, %v3003_v22  ;;  %v1237_v7 = vmul.f32 %v3007_v54, %v3007_v54  ;;  %v1341_v12 = vmul.f32 0.5, %v1340_v36  ;;  %v1351_v21 = vmul.f32 %v2153_v29, %v3062_v19 }
 0x32f   : > { %v2155_v37 = vpop.eup %2154  ;;  %v1238_v1 = vmul.f32 %v3012_v20, %v3012_v20  ;;  %v3127_v46 = vmul.f32 %v3016_v33, %v3016_v33  ;;  %v3131_v62 = vmul.f32 %v3021_v45, %v3021_v45  ;;  %2162 = vrsqrt.f32 %v3107_v28 }
 0x330   : > { %v2157_v18 = vpop.eup %2156  ;;  %v3136_v6 = vmul.f32 %v3102_v23, %v3102_v23  ;;  %v1352_v26 = vmul.f32 %v2153_v29, %v1351_v21  ;;  %v1363_v60 = vmul.f32 %v2155_v37, %v3073_v11  ;;  %2164 = vrsqrt.f32 %v3115_v27 }
 0x331   : > { %v1342_v9 = vsub.f32 1.5, %v1341_v12  ;;  %v1375_v42 = vmul.f32 %v2157_v18, %v3080_v31  ;;  %v3142_v32 = vadd.f32 %v1234_v58, %v2993_v8  ;;  %v3145_v44 = vadd.f32 %v1235_v17, %v2997_v16 }
 0x332   : > { %v2159_v25 = vpop.eup %2158  ;;  %v1353_v49 = vmul.f32 0.5, %v1352_v26  ;;  %v1364_v40 = vmul.f32 %v2155_v37, %v1363_v60  ;;  %v3148_v35 = vadd.f32 %v1236_v43, %v3003_v22  ;;  %v3151_v30 = vadd.f32 %v1237_v7, %v3007_v54 }
 0x333   : > { %v2161_v38 = vpop.eup %2160  ;;  %v1348_v57 = vand.u32 2147483648, %v3047_v15  ;;  %v1376_v63 = vmul.f32 %v2157_v18, %v1375_v42  ;;  %v1387_v24 = vmul.f32 %v2159_v25, %v3090_v50  ;;  %v3156_v8 = vadd.f32 %v1238_v1, %v3012_v20 }
 0x334   : > { %vm1345_vm7 = vcmp.eq.f32.partialorder %v3047_v15, inf  ;;  %v1354_v16 = vsub.f32 1.5, %v1353_v49  ;;  %v1360_v47 = vand.u32 2147483648, %v3062_v19  ;;  %v1365_v34 = vmul.f32 0.5, %v1364_v40 }
 0x335   : > { %v1399_v22 = vmul.f32 %v2161_v38, %v3095_v52  ;;  %v2163_v5 = vpop.eup %2162  ;;  %v1343_v54 = vmul.f32 %v2151_v14, %v1342_v9  ;;  %vm1357_vm8 = vcmp.eq.f32.partialorder %v3062_v19, inf  ;;  %vm1369_vm9 = vcmp.eq.f32.partialorder %v3073_v11, inf }
 0x336   : > { %v1377_v51 = vmul.f32 0.5, %v1376_v63  ;;  %v1388_v41 = vmul.f32 %v2159_v25, %v1387_v24  ;;  %v2165_v48 = vpop.eup %2164  ;;  %v1355_v59 = vmul.f32 %v2153_v29, %v1354_v16  ;;  %v1366_v20 = vsub.f32 1.5, %v1365_v34 }
 0x337   : > { %v1372_v61 = vand.u32 2147483648, %v3073_v11  ;;  %v1400_v36 = vmul.f32 %v2161_v38, %v1399_v22  ;;  %vm1347_vm10 = vcmp.eq.f32.partialorder %v3047_v15, 0.0  ;;  %vm1381_vm11 = vcmp.eq.f32.partialorder %v3080_v31, inf }
 0x338   : > { %v1378_v58 = vsub.f32 1.5, %v1377_v51  ;;  %v1389_v17 = vmul.f32 0.5, %v1388_v41  ;;  %v1411_v14 = vmul.f32 %v2163_v5, %v3107_v28  ;;  %vm1359_vm12 = vcmp.eq.f32.partialorder %v3062_v19, 0.0 }
 0x339   : > { %v1367_v43 = vmul.f32 %v2155_v37, %v1366_v20  ;;  %vm1371_vm13 = vcmp.eq.f32.partialorder %v3073_v11, 0.0  ;;  %v1384_v7 = vand.u32 2147483648, %v3080_v31  ;;  %v1401_v29 = vmul.f32 0.5, %v1400_v36 }
 0x33a   : > { %v1423_v12 = vmul.f32 %v2165_v48, %v3115_v27  ;;  %v1344_v21 = vmul.f32 %v1343_v54, %v3047_v15  ;;  %v1379_v1 = vmul.f32 %v2157_v18, %v1378_v58  ;;  %v1390_v26 = vsub.f32 1.5, %v1389_v17 }
 0x33b   : > { %vm1393_vm14 = vcmp.eq.f32.partialorder %v3090_v50, inf  ;;  %v1412_v60 = vmul.f32 %v2163_v5, %v1411_v14  ;;  %v1356_v9 = vmul.f32 %v1355_v59, %v3062_v19  ;;  %v1368_v42 = vmul.f32 %v1367_v43, %v3073_v11 }
 0x33c   : > { %vm1383_vm15 = vcmp.eq.f32.partialorder %v3080_v31, 0.0  ;;  %v1402_v37 = vsub.f32 1.5, %v1401_v29  ;;  %v1424_v49 = vmul.f32 %v2165_v48, %v1423_v12  ;;  %v1391_v40 = vmul.f32 %v2159_v25, %v1390_v26 }
 0x33d   : > { %v1396_v63 = vand.u32 2147483648, %v3090_v50  ;;  %vm1405_vm0 = vcmp.eq.f32.partialorder %v3095_v52, inf  ;;  %v1413_v24 = vmul.f32 0.5, %v1412_v60  ;;  %v1380_v18 = vmul.f32 %v1379_v1, %v3080_v31 }
 0x33e   : > { %vm1395_vm1 = vcmp.eq.f32.partialorder %v3090_v50, 0.0  ;;  %v1403_v16 = vmul.f32 %v2161_v38, %v1402_v37  ;;  %v1408_v34 = vand.u32 2147483648, %v3095_v52  ;;  %v1425_v22 = vmul.f32 0.5, %v1424_v49 }
 0x33f   : > { %v1346_v54 = vsel %vm1345_vm7, %v3047_v15, %v1344_v21  ;;  %v1414_v51 = vsub.f32 1.5, %v1413_v24  ;;  %vm1417_vm2 = vcmp.eq.f32.partialorder %v3107_v28, inf  ;;  %v1439_v25 = vadd.f32 %v3127_v46, %v3016_v33  ;;  %v3566_v24 = vld [vmem:[#allocation16_spill] sm:$0xff] }
 0x340   : > { %v1358_v41 = vsel %vm1357_vm8, %v3062_v19, %v1356_v9  ;;  %v1370_v38 = vsel %vm1369_vm9, %v3073_v11, %v1368_v42  ;;  %v1392_v59 = vmul.f32 %v1391_v40, %v3090_v50  ;;  %vm1407_vm3 = vcmp.eq.f32.partialorder %v3095_v52, 0.0 }
 0x341   : > { %v1426_v20 = vsub.f32 1.5, %v1425_v22  ;;  %v1404_v36 = vmul.f32 %v1403_v16, %v3095_v52  ;;  %v1415_v58 = vmul.f32 %v2163_v5, %v1414_v51  ;;  %v1440_v17 = vadd.f32 %v3131_v62, %v3021_v45  ;;  %v3567_v16 = vld [vmem:[#allocation17_spill] sm:$0xff] }
 0x342   : > { %v1442_v33 = vadd.f32 %v2641_v39, %v3142_v32  ;;  %v1349_v46 = vsel %vm1347_vm10, %v1348_v57, %v1346_v54  ;;  %v1382_v14 = vsel %vm1381_vm11, %v3080_v31, %v1380_v18  ;;  %vm1419_vm4 = vcmp.eq.f32.partialorder %v3107_v28, 0.0 }
 0x343   : > { %v1427_v43 = vmul.f32 %v2165_v48, %v1426_v20  ;;  %v1443_v5 = vadd.f32 %v2661_v0, %v3145_v44  ;;  %v1361_v39 = vsel %vm1359_vm12, %v1360_v47, %v1358_v41  ;;  %v1373_v45 = vsel %vm1371_vm13, %v1372_v61, %v1370_v38 }
 0x344   : > { %v1444_v62 = vadd.f32 %v2697_v2, %v3148_v35  ;;  %v1445_v32 = vadd.f32 %v3562_v55, %v3151_v30  ;;  %v1394_v57 = vsel %vm1393_vm14, %v3090_v50, %v1392_v59  ;;  %v1416_v0 = vmul.f32 %v1415_v58, %v3107_v28 }
 0x345   : > { %v1450_v44 = vadd.f32 %v1442_v33, %v3047_v15  ;;  %v1451_v48 = vadd.f32 %v1443_v5, %v3062_v19  ;;  %v1385_v47 = vsel %vm1383_vm15, %v1384_v7, %v1382_v14  ;;  %v1406_v2 = vsel %vm1405_vm0, %v3095_v52, %v1404_v36 }
 0x346   : > { %v1446_v55 = vadd.f32 %v3563_v4, %v3156_v8  ;;  %v1452_v35 = vadd.f32 %v1444_v62, %v3073_v11  ;;  %v1428_v30 = vmul.f32 %v1427_v43, %v3115_v27  ;;  %v1453_v61 = vadd.f32 %v1445_v32, %v3080_v31 }
 0x347   : > { %v1458_v29 = vadd.f32 %v1450_v44, %v1349_v46  ;;  %v1459_v15 = vadd.f32 %v1451_v48, %v1361_v39  ;;  %v1397_v19 = vsel %vm1395_vm1, %v1396_v63, %v1394_v57  ;;  %v1441_v7 = vadd.f32 %v3136_v6, %v3102_v23 }
 0x348   : > { %v1447_v12 = vadd.f32 %v3565_v56, %v1439_v25  ;;  %v1460_v21 = vadd.f32 %v1452_v35, %v1373_v45  ;;  %v1418_v4 = vsel %vm1417_vm2, %v3107_v28, %v1416_v0  ;;  %v1454_v11 = vadd.f32 %v1446_v55, %v3090_v50  ;;  %v3570_v25 = vld [vmem:[#allocation22_spill] sm:$0xff] }
 0x349   : > { %v1461_v8 = vadd.f32 %v1453_v61, %v1385_v47  ;;  %v1466_v1 = vadd.f32 %v1459_v15, %v1458_v29  ;;  %v1409_v31 = vsel %vm1407_vm3, %v1408_v34, %v1406_v2  ;;  %v1420_v26 = vand.u32 2147483648, %v3107_v28  ;;  %v3568_v34 = vld [vmem:[#allocation18_spill] sm:$0xff] }
 0x34a   : > { %vm1429_vm5 = vcmp.eq.f32.partialorder %v3115_v27, inf  ;;  %v1448_v23 = vadd.f32 %v2878_v13, %v1440_v17  ;;  %v1455_v6 = vadd.f32 %v1447_v12, %v3095_v52  ;;  %v1462_v60 = vadd.f32 %v1454_v11, %v1397_v19 }
 0x34b   : > { %v1430_v56 = vsel %vm1429_vm5, %v3115_v27, %v1428_v30  ;;  %v1467_v9 = vadd.f32 %v1466_v1, %v1460_v21  ;;  %2166 = vpow2.f32 %v2988_v3  ;;  %v1421_v50 = vsel %vm1419_vm4, %v1420_v26, %v1418_v4 }
 0x34c   : > { %vm1431_vm6 = vcmp.eq.f32.partialorder %v3115_v27, 0.0  ;;  %v1432_v42 = vand.u32 2147483648, %v3115_v27  ;;  %v1449_v37 = vadd.f32 %v2984_v53, %v1441_v7  ;;  %v1456_v49 = vadd.f32 %v1448_v23, %v3107_v28  ;;  %v3569_v53 = vld [vmem:[#allocation20_spill] sm:$0xff] }
 0x34d   : > { %v1463_v13 = vadd.f32 %v1455_v6, %v1409_v31  ;;  %v1468_v40 = vadd.f32 %v1467_v9, %v1461_v8  ;;  %2168 = vrsqrt.f32 %v3566_v24  ;;  %v3269_v38 = vmul.f32 %v3566_v24, %v3566_v24 }
 0x34e   : > { %v1433_v63 = vsel %vm1431_vm6, %v1432_v42, %v1430_v56  ;;  %v1457_v52 = vadd.f32 %v1449_v37, %v3115_v27  ;;  %v1464_v18 = vadd.f32 %v1456_v49, %v1421_v50  ;;  %2170 = vrsqrt.f32 %v3567_v16  ;;  %v3571_v27 = vld [vmem:[#allocation25_spill] sm:$0xff] }
 0x34f   : > { %v1469_v3 = vadd.f32 %v1468_v40, %v1462_v60  ;;  %2172 = vrsqrt.f32 %v3568_v34  ;;  %v3274_v36 = vmul.f32 %v3567_v16, %v3567_v16  ;;  %v3280_v33 = vmul.f32 %v3568_v34, %v3568_v34 }
 0x350   : > { %v1465_v22 = vadd.f32 %v1457_v52, %v1433_v63  ;;  %2174 = vrsqrt.f32 %v3569_v53  ;;  %v3284_v46 = vmul.f32 %v3569_v53, %v3569_v53  ;;  %v3288_v14 = vmul.f32 %v3570_v25, %v3570_v25 }
 0x351   : > { %v1470_v54 = vadd.f32 %v1469_v3, %v1463_v13  ;;  %v3263_v51 = vpop.eup %2166  ;;  %2176 = vrsqrt.f32 %v3570_v25  ;;  %v3293_v5 = vmul.f32 %v3571_v27, %v3571_v27  ;;  %v3299_v32 = vmul.f32 %v2979_v10, %v2979_v10 }
 0x352   : > { %2178 = vrsqrt.f32 %v3571_v27  ;;  %vm1644_vm7 = vcmp.eq.f32.partialorder %v3566_v24, inf  ;;  %v1647_v57 = vand.u32 2147483648, %v3566_v24  ;;  %vm1646_vm8 = vcmp.eq.f32.partialorder %v3566_v24, 0.0 }
 0x353   : > { %v1471_v28 = vadd.f32 %v1470_v54, %v1464_v18  ;;  %v2169_v41 = vpop.eup %2168  ;;  %2180 = vrsqrt.f32 %v2979_v10  ;;  %vm1656_vm9 = vcmp.eq.f32.partialorder %v3567_v16, inf  ;;  %v1659_v30 = vand.u32 2147483648, %v3567_v16 }
 0x354   : > { %v2171_v59 = vpop.eup %2170  ;;  %v1638_v58 = vmul.f32 %v2169_v41, %v3566_v24  ;;  %2182 = vrsqrt.f32 %v3263_v51  ;;  %v1671_v61 = vand.u32 2147483648, %v3568_v34  ;;  %vm1668_vm10 = vcmp.eq.f32.partialorder %v3568_v34, inf }
 0x355   : > { %v1472_v20 = vadd.f32 %v1471_v28, %v1465_v22  ;;  %v2173_v17 = vpop.eup %2172  ;;  %v1650_v43 = vmul.f32 %v2171_v59, %v3567_v16  ;;  %vm1658_vm11 = vcmp.eq.f32.partialorder %v3567_v16, 0.0  ;;  %vm1680_vm12 = vcmp.eq.f32.partialorder %v3569_v53, inf }
 0x356   : > { %v1639_v39 = vmul.f32 %v2169_v41, %v1638_v58  ;;  %v1662_v45 = vmul.f32 %v2173_v17, %v3568_v34  ;;  %v2175_v62 = vpop.eup %2174  ;;  %v1683_v11 = vand.u32 2147483648, %v3569_v53  ;;  %vm1670_vm13 = vcmp.eq.f32.partialorder %v3568_v34, 0.0 }
 0x357   : > { %1473 = vadd.xlane.f32.xlu2 %v1472_v20  ;;  %v1651_v0 = vmul.f32 %v2171_v59, %v1650_v43  ;;  %v2177_v44 = vpop.eup %2176  ;;  %v1674_v2 = vmul.f32 %v2175_v62, %v3569_v53  ;;  %vm1682_vm14 = vcmp.eq.f32.partialorder %v3569_v53, 0.0  ;;  %vm1692_vm15 = vcmp.eq.f32.partialorder %v3570_v25, inf }
 0x358   : > { %v1640_v48 = vmul.f32 0.5, %v1639_v39  ;;  %v1663_v47 = vmul.f32 %v2173_v17, %v1662_v45  ;;  %v2179_v55 = vpop.eup %2178  ;;  %v1686_v29 = vmul.f32 %v2177_v44, %v3570_v25  ;;  %vm1694_vm0 = vcmp.eq.f32.partialorder %v3570_v25, 0.0 }
 0x359   : > { %v1652_v35 = vmul.f32 0.5, %v1651_v0  ;;  %v2181_v15 = vpop.eup %2180  ;;  %v1675_v12 = vmul.f32 %v2175_v62, %v1674_v2  ;;  %v1698_v21 = vmul.f32 %v2179_v55, %v3571_v27  ;;  %vm1704_vm1 = vcmp.eq.f32.partialorder %v3571_v27, inf }
 0x35a   : > { %v1641_v19 = vsub.f32 1.5, %v1640_v48  ;;  %v1664_v7 = vmul.f32 0.5, %v1663_v47  ;;  %v1687_v8 = vmul.f32 %v2177_v44, %v1686_v29  ;;  %v1710_v1 = vmul.f32 %v2181_v15, %v2979_v10  ;;  %v2183_v31 = vpop.eup %2182 }
 0x35b   : > { %v1653_v4 = vsub.f32 1.5, %v1652_v35  ;;  %v1676_v56 = vmul.f32 0.5, %v1675_v12  ;;  %v1699_v6 = vmul.f32 %v2179_v55, %v1698_v21  ;;  %v1722_v42 = vmul.f32 %v2183_v31, %v3263_v51 }
 0x35c   : > { %v1642_v26 = vmul.f32 %v2169_v41, %v1641_v19  ;;  %v1665_v23 = vsub.f32 1.5, %v1664_v7  ;;  %v1688_v9 = vmul.f32 0.5, %v1687_v8  ;;  %v1711_v50 = vmul.f32 %v2181_v15, %v1710_v1 }
 0x35d   : > { %v1654_v60 = vmul.f32 %v2171_v59, %v1653_v4  ;;  %v1677_v13 = vsub.f32 1.5, %v1676_v56  ;;  %v1700_v40 = vmul.f32 0.5, %v1699_v6  ;;  %v1723_v3 = vmul.f32 %v2183_v31, %v1722_v42 }
 0x35e   : > { %v1643_v37 = vmul.f32 %v3566_v24, %v1642_v26  ;;  %v1666_v49 = vmul.f32 %v2173_v17, %v1665_v23  ;;  %v1689_v52 = vsub.f32 1.5, %v1688_v9  ;;  %v1712_v18 = vmul.f32 0.5, %v1711_v50 }
 0x35f   : > { %v1655_v63 = vmul.f32 %v3567_v16, %v1654_v60  ;;  %v1678_v28 = vmul.f32 %v2175_v62, %v1677_v13  ;;  %v1701_v41 = vsub.f32 1.5, %v1700_v40  ;;  %v1724_v0 = vmul.f32 0.5, %v1723_v3 }
 0x360   : > { %v1645_v22 = vsel %vm1644_vm7, %v3566_v24, %v1643_v37  ;;  %v1667_v54 = vmul.f32 %v3568_v34, %v1666_v49  ;;  %v1690_v58 = vmul.f32 %v2177_v44, %v1689_v52  ;;  %v1713_v17 = vsub.f32 1.5, %v1712_v18 }
 0x361   : > { %v3326_v59 = vsel %vm1646_vm8, %v1647_v57, %v1645_v22  ;;  %v1657_v20 = vsel %vm1656_vm9, %v3567_v16, %v1655_v63  ;;  %v1679_v43 = vmul.f32 %v3569_v53, %v1678_v28  ;;  %v1702_v39 = vmul.f32 %v2179_v55, %v1701_v41 }
 0x362   : > { %v1669_v45 = vsel %vm1668_vm10, %v3568_v34, %v1667_v54  ;;  %v1691_v62 = vmul.f32 %v3570_v25, %v1690_v58  ;;  %v1714_v57 = vmul.f32 %v2181_v15, %v1713_v17  ;;  %v3340_v48 = vsel %vm1658_vm11, %v1659_v30, %v1657_v20 }
 0x363   : > { %v1681_v44 = vsel %vm1680_vm12, %v3569_v53, %v1679_v43  ;;  %v1703_v47 = vmul.f32 %v3571_v27, %v1702_v39  ;;  %2184 = vrsqrt.f32 %v3326_v59  ;;  %v1695_v55 = vand.u32 2147483648, %v3570_v25 }
 0x364   : > { %v1693_v2 = vsel %vm1692_vm15, %v3570_v25, %v1691_v62  ;;  %v1715_v35 = vmul.f32 %v2979_v10, %v1714_v57  ;;  %v1725_v29 = vsub.f32 1.5, %v1724_v0  ;;  %v3352_v15 = vsel %vm1670_vm13, %v1671_v61, %v1669_v45 }
 0x365   : > { %vm1706_vm2 = vcmp.eq.f32.partialorder %v3571_v27, 0.0  ;;  %vm1716_vm3 = vcmp.eq.f32.partialorder %v2979_v10, inf  ;;  %v3359_v30 = vsel %vm1682_vm14, %v1683_v11, %v1681_v44  ;;  %v1705_v19 = vsel %vm1704_vm1, %v3571_v27, %v1703_v47 }
 0x366   : > { %v1726_v7 = vmul.f32 %v2183_v31, %v1725_v29  ;;  %2186 = vrsqrt.f32 %v3340_v48  ;;  %v3365_v12 = vsel %vm1694_vm0, %v1695_v55, %v1693_v2  ;;  %v1707_v61 = vand.u32 2147483648, %v3571_v27 }
 0x367   : > { %v1717_v21 = vsel %vm1716_vm3, %v2979_v10, %v1715_v35  ;;  %vm1718_vm4 = vcmp.eq.f32.partialorder %v2979_v10, 0.0  ;;  %v1719_v4 = vand.u32 2147483648, %v2979_v10  ;;  %vm1728_vm5 = vcmp.eq.f32.partialorder %v3263_v51, inf }
 0x368   : > { %v1727_v11 = vmul.f32 %v3263_v51, %v1726_v7  ;;  %2188 = vrsqrt.f32 %v3352_v15  ;;  %v3374_v1 = vsel %vm1706_vm2, %v1707_v61, %v1705_v19  ;;  %vm1730_vm6 = vcmp.eq.f32.partialorder %v3263_v51, 0.0 }
 0x369   : > { %v2185_v8 = vpop.eup %2184  ;;  %v1731_v31 = vand.u32 2147483648, %v3263_v51  ;;  %2190 = vrsqrt.f32 %v3359_v30  ;;  %v3379_v26 = vsel %vm1718_vm4, %v1719_v4, %v1717_v21  ;;  %v3386_v6 = vmul.f32 %v3263_v51, %v3263_v51 }
 0x36a   : > { %v1729_v23 = vsel %vm1728_vm5, %v3263_v51, %v1727_v11  ;;  %v1734_v56 = vmul.f32 %v2185_v8, %v3326_v59  ;;  %2192 = vrsqrt.f32 %v3365_v12  ;;  %v1629_v60 = vmul.f32 %v3269_v38, %v3269_v38 }
 0x36b   : > { %v3390_v9 = vsel %vm1730_vm6, %v1731_v31, %v1729_v23  ;;  %v1630_v42 = vmul.f32 %v3274_v36, %v3274_v36  ;;  %v1631_v37 = vmul.f32 %v3280_v33, %v3280_v33  ;;  %2194 = vrsqrt.f32 %v3374_v1 }
 0x36c   : > { %v2187_v50 = vpop.eup %2186  ;;  %v1735_v49 = vmul.f32 %v2185_v8, %v1734_v56  ;;  %v1632_v13 = vmul.f32 %v3284_v46, %v3284_v46  ;;  %v1633_v40 = vmul.f32 %v3288_v14, %v3288_v14  ;;  %2196 = vrsqrt.f32 %v3379_v26 }
 0x36d   : > { %v1746_v63 = vmul.f32 %v2187_v50, %v3340_v48  ;;  %v3405_v18 = vmul.f32 %v3293_v5, %v3293_v5  ;;  %v3409_v3 = vmul.f32 %v3299_v32, %v3299_v32  ;;  %2198 = vrsqrt.f32 %v3390_v9 }
 0x36e   : > { %v2189_v52 = vpop.eup %2188  ;;  %v1736_v22 = vmul.f32 0.5, %v1735_v49  ;;  %v3414_v28 = vmul.f32 %v3386_v6, %v3386_v6  ;;  %v3418_v58 = vadd.f32 %v1629_v60, %v3269_v38  ;;  %v3422_v45 = vadd.f32 %v1630_v42, %v3274_v36 }
 0x36f   : > { %v2191_v54 = vpop.eup %2190  ;;  %v1747_v41 = vmul.f32 %v2187_v50, %v1746_v63  ;;  %v1758_v20 = vmul.f32 %v2189_v52, %v3352_v15  ;;  %v3425_v62 = vadd.f32 %v1631_v37, %v3280_v33  ;;  %v3429_v47 = vadd.f32 %v1632_v13, %v3284_v46 }
 0x370   : > { %v2193_v17 = vpop.eup %2192  ;;  %v1737_v43 = vsub.f32 1.5, %v1736_v22  ;;  %v1770_v39 = vmul.f32 %v2191_v54, %v3359_v30  ;;  %v1743_v55 = vand.u32 2147483648, %v3326_v59  ;;  %v3433_v29 = vadd.f32 %v1633_v40, %v3288_v14 }
 0x371   : > { %v1748_v57 = vmul.f32 0.5, %v1747_v41  ;;  %v1759_v0 = vmul.f32 %v2189_v52, %v1758_v20  ;;  %v1782_v44 = vmul.f32 %v2193_v17, %v3365_v12  ;;  %v2195_v2 = vpop.eup %2194  ;;  %vm1740_vm7 = vcmp.eq.f32.partialorder %v3326_v59, inf }
 0x372   : > { %v1738_v38 = vmul.f32 %v2185_v8, %v1737_v43  ;;  %v1771_v35 = vmul.f32 %v2191_v54, %v1770_v39  ;;  %v2197_v36 = vpop.eup %2196  ;;  %v1794_v61 = vmul.f32 %v2195_v2, %v3374_v1  ;;  %vm1752_vm8 = vcmp.eq.f32.partialorder %v3340_v48, inf }
 0x373   : > { %v1749_v33 = vsub.f32 1.5, %v1748_v57  ;;  %v1760_v19 = vmul.f32 0.5, %v1759_v0  ;;  %v1783_v7 = vmul.f32 %v2193_v17, %v1782_v44  ;;  %v2199_v21 = vpop.eup %2198  ;;  %v1755_v46 = vand.u32 2147483648, %v3340_v48 }
 0x374   : > { %vm1764_vm9 = vcmp.eq.f32.partialorder %v3352_v15, inf  ;;  %v1772_v4 = vmul.f32 0.5, %v1771_v35  ;;  %v1806_v11 = vmul.f32 %v2197_v36, %v3379_v26  ;;  %v1795_v23 = vmul.f32 %v2195_v2, %v1794_v61 }
 0x375   : > { %v1750_v14 = vmul.f32 %v2187_v50, %v1749_v33  ;;  %v1761_v8 = vsub.f32 1.5, %v1760_v19  ;;  %v1784_v31 = vmul.f32 0.5, %v1783_v7  ;;  %vm1742_vm10 = vcmp.eq.f32.partialorder %v3326_v59, 0.0 }
 0x376   : > { %v1767_v56 = vand.u32 2147483648, %v3352_v15  ;;  %v1773_v60 = vsub.f32 1.5, %v1772_v4  ;;  %v1807_v42 = vmul.f32 %v2197_v36, %v1806_v11  ;;  %v1818_v37 = vmul.f32 %v2199_v21, %v3390_v9 }
 0x377   : > { %v1739_v49 = vmul.f32 %v1738_v38, %v3326_v59  ;;  %vm1754_vm11 = vcmp.eq.f32.partialorder %v3340_v48, 0.0  ;;  %v1762_v13 = vmul.f32 %v2189_v52, %v1761_v8  ;;  %vm1766_vm12 = vcmp.eq.f32.partialorder %v3352_v15, 0.0 }
 0x378   : > { %vm1776_vm13 = vcmp.eq.f32.partialorder %v3359_v30, inf  ;;  %v1785_v50 = vsub.f32 1.5, %v1784_v31  ;;  %v1774_v40 = vmul.f32 %v2191_v54, %v1773_v60  ;;  %v1796_v63 = vmul.f32 0.5, %v1795_v23 }
 0x379   : > { %v1808_v22 = vmul.f32 0.5, %v1807_v42  ;;  %v1819_v41 = vmul.f32 %v2199_v21, %v1818_v37  ;;  %v1751_v20 = vmul.f32 %v1750_v14, %v3340_v48  ;;  %v1763_v43 = vmul.f32 %v1762_v13, %v3352_v15 }
 0x37a   : > { %vm1778_vm14 = vcmp.eq.f32.partialorder %v3359_v30, 0.0  ;;  %v1779_v39 = vand.u32 2147483648, %v3359_v30  ;;  %v1786_v57 = vmul.f32 %v2193_v17, %v1785_v50  ;;  %vm1788_vm15 = vcmp.eq.f32.partialorder %v3365_v12, inf }
 0x37b   : > { %v1791_v52 = vand.u32 2147483648, %v3365_v12  ;;  %v1797_v0 = vsub.f32 1.5, %v1796_v63  ;;  %v1809_v44 = vsub.f32 1.5, %v1808_v22  ;;  %v1775_v54 = vmul.f32 %v1774_v40, %v3359_v30 }
 0x37c   : > { %vm1790_vm0 = vcmp.eq.f32.partialorder %v3365_v12, 0.0  ;;  %vm1800_vm1 = vcmp.eq.f32.partialorder %v3374_v1, inf  ;;  %v1803_v38 = vand.u32 2147483648, %v3374_v1  ;;  %v1820_v35 = vmul.f32 0.5, %v1819_v41 }
 0x37d   : > { %v1741_v33 = vsel %vm1740_vm7, %v3326_v59, %v1739_v49  ;;  %v1787_v17 = vmul.f32 %v1786_v57, %v3365_v12  ;;  %v1798_v19 = vmul.f32 %v2195_v2, %v1797_v0  ;;  %vm1812_vm2 = vcmp.eq.f32.partialorder %v3379_v26, inf }
 0x37e   : > { %v1834_v7 = vadd.f32 %v3405_v18, %v3293_v5  ;;  %v1753_v61 = vsel %vm1752_vm8, %v3340_v48, %v1751_v20  ;;  %v1765_v4 = vsel %vm1764_vm9, %v3352_v15, %v1763_v43  ;;  %vm1802_vm3 = vcmp.eq.f32.partialorder %v3374_v1, 0.0 }
 0x37f   : > { %v1810_v11 = vmul.f32 %v2197_v36, %v1809_v44  ;;  %v1821_v14 = vsub.f32 1.5, %v1820_v35  ;;  %v1799_v8 = vmul.f32 %v1798_v19, %v3374_v1  ;;  %v1835_v2 = vadd.f32 %v3409_v3, %v3299_v32 }
 0x380   : > { %v1837_v5 = vadd.f32 %v3566_v24, %v3418_v58  ;;  %v1838_v18 = vadd.f32 %v3567_v16, %v3422_v45  ;;  %v1744_v31 = vsel %vm1742_vm10, %v1743_v55, %v1741_v33  ;;  %v1777_v36 = vsel %vm1776_vm13, %v3359_v30, %v1775_v54 }
 0x381   : > { %v1822_v23 = vmul.f32 %v2199_v21, %v1821_v14  ;;  %v1839_v60 = vadd.f32 %v3568_v34, %v3425_v62  ;;  %v1756_v32 = vsel %vm1754_vm11, %v1755_v46, %v1753_v61  ;;  %v1768_v24 = vsel %vm1766_vm12, %v1767_v56, %v1765_v4 }
 0x382   : > { %v1789_v16 = vsel %vm1788_vm15, %v3365_v12, %v1787_v17  ;;  %v1840_v3 = vadd.f32 %v3569_v53, %v3429_v47  ;;  %v1811_v58 = vmul.f32 %v1810_v11, %v3379_v26  ;;  %v1845_v45 = vadd.f32 %v1837_v5, %v3326_v59 }
 0x383   : > { %v1846_v55 = vadd.f32 %v1838_v18, %v3340_v48  ;;  %v1847_v34 = vadd.f32 %v1839_v60, %v3352_v15  ;;  %v1780_v62 = vsel %vm1778_vm14, %v1779_v39, %v1777_v36  ;;  %v1801_v21 = vsel %vm1800_vm1, %v3374_v1, %v1799_v8 }
 0x384   : > { %v1823_v46 = vmul.f32 %v1822_v23, %v3390_v9  ;;  %v1841_v53 = vadd.f32 %v3570_v25, %v3433_v29  ;;  %v1848_v47 = vadd.f32 %v1840_v3, %v3359_v30  ;;  %v1853_v56 = vadd.f32 %v1845_v45, %v1744_v31 }
 0x385   : > { %v1854_v59 = vadd.f32 %v1846_v55, %v1756_v32  ;;  %v1855_v42 = vadd.f32 %v1847_v34, %v1768_v24  ;;  %v1792_v48 = vsel %vm1790_vm0, %v1791_v52, %v1789_v16  ;;  %vm1814_vm4 = vcmp.eq.f32.partialorder %v3379_v26, 0.0 }
 0x386   : > { %v1836_v15 = vadd.f32 %v3414_v28, %v3386_v6  ;;  %v1842_v37 = vadd.f32 %v3571_v27, %v1834_v7  ;;  %v1813_v49 = vsel %vm1812_vm2, %v3379_v26, %v1811_v58  ;;  %v1849_v25 = vadd.f32 %v1841_v53, %v3365_v12 }
 0x387   : > { %v1856_v30 = vadd.f32 %v1848_v47, %v1780_v62  ;;  %v1861_v29 = vadd.f32 %v1854_v59, %v1853_v56  ;;  %v1804_v13 = vsel %vm1802_vm3, %v1803_v38, %v1801_v21  ;;  %v1815_v50 = vand.u32 2147483648, %v3379_v26 }
 0x388   : > { %vm1824_vm5 = vcmp.eq.f32.partialorder %v3390_v9, inf  ;;  %v1843_v40 = vadd.f32 %v2979_v10, %v1835_v2  ;;  %v1850_v27 = vadd.f32 %v1842_v37, %v3374_v1  ;;  %v1857_v28 = vadd.f32 %v1849_v25, %v1792_v48 }
 0x389   : > { %v1825_v6 = vsel %vm1824_vm5, %v3390_v9, %v1823_v46  ;;  %v1862_v63 = vadd.f32 %v1861_v29, %v1855_v42  ;;  %v1816_v22 = vsel %vm1814_vm4, %v1815_v50, %v1813_v49  ;;  %vm1826_vm6 = vcmp.eq.f32.partialorder %v3390_v9, 0.0 }
 0x38a   : > { %v1827_v12 = vand.u32 2147483648, %v3390_v9  ;;  %v1844_v41 = vadd.f32 %v3263_v51, %v1836_v15  ;;  %v1851_v20 = vadd.f32 %v1843_v40, %v3379_v26  ;;  %v1858_v43 = vadd.f32 %v1850_v27, %v1804_v13 }
 0x38b   : > { %v1863_v39 = vadd.f32 %v1862_v63, %v1856_v30  ;;  %v1118_v35 = vpop.xlane.xlu1 %1117 }
 0x38c   : > { %v1828_v57 = vsel %vm1826_vm6, %v1827_v12, %v1825_v6  ;;  %v1852_v10 = vadd.f32 %v1844_v41, %v3390_v9  ;;  %v1859_v52 = vadd.f32 %v1851_v20, %v1816_v22  ;;  %v1119_v33 = vrot.slane %v1118_v35, 4 }
 0x38d   : > { %v1864_v0 = vadd.f32 %v1863_v39, %v1857_v28 }
 0x38e   : > { %v1860_v44 = vadd.f32 %v1852_v10, %v1828_v57  ;;  %v1120_v17 = vadd.f32 %v1119_v33, %v1118_v35 }
 0x38f   : > { %v1865_v1 = vadd.f32 %v1864_v0, %v1858_v43 }
 0x390   : > { %v1121_v19 = vrot.slane %v1120_v17, 2 }
 0x391   : > { %v1866_v54 = vadd.f32 %v1865_v1, %v1859_v52 }
 0x392   : > { %v1122_v7 = vadd.f32 %v1121_v19, %v1120_v17 }
 0x393   : > { %v1867_v38 = vadd.f32 %v1866_v54, %v1860_v44 }
 0x394   : > { %v1123_v51 = vrot.slane %v1122_v7, 1 }
 0x395   : > { %1868 = vadd.xlane.f32.xlu0 %v1867_v38 }
 0x396   : > { %v1124_v61 = vadd.f32 %v1123_v51, %v1122_v7 }
 0x398   : > { %1997 = vpush %v1124_v61 }
 0x3c9   : > { %s1998_s16 = spop %1997 }
 0x3ca   : > { %v1474_v26 = vpop.xlane.xlu2 %1473 }
 0x3cb   : > { %v1475_v4 = vrot.slane %v1474_v26, 4 }
 0x3cd   : > { %v1476_v11 = vadd.f32 %v1475_v4, %v1474_v26 }
 0x3cf   : > { %v1477_v14 = vrot.slane %v1476_v11, 2 }
 0x3d1   : > { %v1478_v9 = vadd.f32 %v1477_v14, %v1476_v11 }
 0x3d3   : > { %v1479_v8 = vrot.slane %v1478_v9, 1 }
 0x3d5   : > { %v1480_v2 = vadd.f32 %v1479_v8, %v1478_v9 }
 0x3d7   : > { %1999 = vpush %v1480_v2 }
 0x408   : > { %v1869_v5 = vpop.xlane.xlu0 %1868  ;;  %s2000_s17 = spop %1999 }
 0x409   : > { %v1870_v18 = vrot.slane %v1869_v5, 4  ;;  %s1482_s18 = smul.f32 2.0, %s2000_s17 }
 0x40b   : > { %v1871_v31 = vadd.f32 %v1870_v18, %v1869_v5  ;;  %s1483_s20 = ssub.f32 %s1998_s16, %s1482_s18 }
 0x40d   : > { %v1872_v36 = vrot.slane %v1871_v31, 2 }
 0x40f   : > { %v1873_v23 = vadd.f32 %v1872_v36, %v1871_v31 }
 0x411   : > { %v1874_v60 = vrot.slane %v1873_v23, 1 }
 0x413   : > { %v1875_v32 = vadd.f32 %v1874_v60, %v1873_v23 }
 0x415   : > { %2001 = vpush %v1875_v32 }
 0x446   : > { %s2002_s21 = spop %2001 }
 0x447   : > { %s1877_s22 = sadd.f32 %s2002_s21, %s1483_s20 }
 0x449   : > { %s1879_s26 = sadd.f32 %s1964_s19, %s1877_s22 }
 0x44b   : > { %1881 = sst [smem:[#allocation2 + $0x1]] %s1879_s26  ;;  %s1887_s27 = smul.f32 0.015625, %s1879_s26 }
 0x44d   : > { %2012 = sst [smem:[#allocation12]] (%p2028_p7), %s1887_s27 }
 0x44e   : > { %2014 = dma.smem_to_hbm (%p2028_p7), %s2301_s28, 16, %s1897_s25, [#allocation9]  }
 0x44f   : > { %2287 = dma.done.wait (%p2028_p7), [#allocation9], 16  }
 0x450   : > { %2289 = vsyncadd (%p2028_p7), [#allocation9], 4294967280 }
 0x451   : > { %1905 = sfence }
 0x452 PF: > { %s15_s9 = sadd.s32 1, %s2292_s9  }
 0x453   : > { %p12_p8 = scmp.ge.s32.totalorder %s15_s9, 4  }
 0x455   :  { %14 = sbr.rel (!%p12_p8) target bundleno = 3 (0x3), region = 77 }
 0x45a   :  { %1911 = vsyncpa [#allocation8], 1 }
 0x45b   :  { %1913 = vsyncpa [#allocation8 + $0x1], 1 }
 0x45c   :  { %1914 = vsyncpa [#allocation11], 1 }
 0x45d   :  { %1915 = vsyncpa [#allocation9], 1 }
 0x45e   :  { %1917 = vsyncpa [#allocation9 + $0x1], 1 }

</bundles_post_ra>
